<compile_context>
chip_gen: v7x
topology: tpu7x:2x2x1
jax: 0.10.0
libtpu: 0.0.40
codegen_flags: <defaults>
</compile_context>

<pallas_src>
import jax
import jax.numpy as jnp
from jax.experimental import pallas as pl
from jax.experimental.pallas import tpu as pltpu

IN_FEATURES = 32          # nn.Linear(None, 512) -> concrete small input width
IN_PAD = 128              # lane-dense / MXU-K-dense padding of the input width
H1, H2 = 512, 128
OUT = 5
OUT_PAD = 128             # lane-dense padding of the class dimension
TB = 256                  # batch tile (>=256 rows keeps the MXU M-dim busy)


def mlp_kernel(x_ref, w1_ref, b1_ref, w2_ref, b2_ref, w3_ref, b3_ref, o_ref):
    # fc1 + ReLU (x and w1 are zero-padded along K -> exact result)
    x = x_ref[...]
    h1 = jnp.dot(x, w1_ref[...], preferred_element_type=jnp.float32) + b1_ref[...]
    h1 = jnp.maximum(h1, 0.0)
    # fc2 + ReLU
    h2 = jnp.dot(h1, w2_ref[...], preferred_element_type=jnp.float32) + b2_ref[...]
    h2 = jnp.maximum(h2, 0.0)
    # fc3 + softmax over the last axis.  Padded logit columns carry b3 = -1e30,
    # so exp(pad - max) == 0 and the denominator only sees the 5 real classes.
    logits = jnp.dot(h2, w3_ref[...], preferred_element_type=jnp.float32) + b3_ref[...]
    m = jnp.max(logits, axis=-1, keepdims=True)
    e = jnp.exp(logits - m)
    s = jnp.sum(e, axis=-1, keepdims=True)
    o_ref[...] = (e * (1.0 / s)).astype(o_ref.dtype)  # mul by reciprocal, exact


def mymodel_forward(x, padded_params):
    w1p, b1, w2, b2, w3p, b3p = padded_params
    B = x.shape[0]
    n_tiles = pl.cdiv(B, TB)
    B_pad = n_tiles * TB

    # Pad the batch to a multiple of TB and the feature dim to 128 lanes.
    xp = jnp.zeros((B_pad, IN_PAD), x.dtype).at[:B, :IN_FEATURES].set(x)

    flops = 2 * B_pad * (IN_PAD * H1 + H1 * H2 + H2 * OUT_PAD)
    bytes_accessed = (
        xp.size * 4
        + (w1p.size + b1.size + w2.size + b2.size + w3p.size + b3p.size) * 4
        + B_pad * OUT_PAD * 4
    )

    out_padded = pl.pallas_call(
        mlp_kernel,
        out_shape=jax.ShapeDtypeStruct((B_pad, OUT_PAD), jnp.float32),
        grid=(n_tiles,),
        in_specs=[
            pl.BlockSpec((TB, IN_PAD), lambda i: (i, 0)),      # x: batch-tiled
            pl.BlockSpec((IN_PAD, H1), lambda i: (0, 0)),      # w1: resident
            pl.BlockSpec((1, H1), lambda i: (0, 0)),           # b1: resident
            pl.BlockSpec((H1, H2), lambda i: (0, 0)),          # w2: resident
            pl.BlockSpec((1, H2), lambda i: (0, 0)),           # b2: resident
            pl.BlockSpec((H2, OUT_PAD), lambda i: (0, 0)),     # w3: resident
            pl.BlockSpec((1, OUT_PAD), lambda i: (0, 0)),      # b3: resident
        ],
        out_specs=pl.BlockSpec((TB, OUT_PAD), lambda i: (i, 0)),
        compiler_params=pltpu.CompilerParams(
            dimension_semantics=("parallel",),                 # 2-TC sharding on v7x
        ),
        cost_estimate=pl.CostEstimate(
            flops=flops,
            transcendentals=B_pad * OUT_PAD,
            bytes_accessed=bytes_accessed,
        ),
    )(xp, w1p, b1, w2, b2, w3p, b3p)

    # Slice away batch padding and the 123 padded class columns.
    return out_padded[:B, :OUT]


def init_params(key):
    # PyTorch nn.Linear default init: U(-1/sqrt(fan_in), 1/sqrt(fan_in))
    ks = jax.random.split(key, 6)

    def linear(kw, kb, fan_in, fan_out):
        bound = 1.0 / jnp.sqrt(jnp.float32(fan_in))
        # weights stored pre-transposed: (in, out)
        w = jax.random.uniform(kw, (fan_in, fan_out), jnp.float32, -bound, bound)
        b = jax.random.uniform(kb, (1, fan_out), jnp.float32, -bound, bound)
        return w, b

    w1, b1 = linear(ks[0], ks[1], IN_FEATURES, H1)
    w2, b2 = linear(ks[2], ks[3], H1, H2)
    w3, b3 = linear(ks[4], ks[5], H2, OUT)
    return (w1, b1, w2, b2, w3, b3)


def pad_params(params):
    """Build the lane-padded parameter set the kernel consumes (exact math)."""
    w1, b1, w2, b2, w3, b3 = params
    w1p = jnp.zeros((IN_PAD, H1), jnp.float32).at[:IN_FEATURES, :].set(w1)
    w3p = jnp.zeros((H2, OUT_PAD), jnp.float32).at[:, :OUT].set(w3)
    # Padded bias columns get a huge negative value so exp() of them is 0.
    b3p = jnp.full((1, OUT_PAD), -1e30, jnp.float32).at[:, :OUT].set(b3)
    return (w1p, b1, w2, b2, w3p, b3p)


def reference(x, params):
    w1, b1, w2, b2, w3, b3 = params
    h1 = jnp.maximum(x @ w1 + b1, 0.0)
    h2 = jnp.maximum(h1 @ w2 + b2, 0.0)
    return jax.nn.softmax(h2 @ w3 + b3, axis=1)


if __name__ == "__main__":
    key = jax.random.PRNGKey(0)
    kx, kp = jax.random.split(key)
    batch = 8
    x = jax.random.normal(kx, (batch, IN_FEATURES), jnp.float32)
    params = init_params(kp)
    padded_params = pad_params(params)

    out = mymodel_forward(x, padded_params)
    out = jax.block_until_ready(out)

    ref = reference(x, params)
    assert out.shape == (batch, OUT)
    assert jnp.allclose(out, ref, atol=1e-5, rtol=1e-5)
    print("KERNEL_OK")
</pallas_src>

<mosaic_0001>
module attributes {stable_mosaic.version = 11 : i64} {
  func.func @mlp_kernel(%arg0: i32, %arg1: memref<256x128xf32, #tpu.memory_space<vmem>>, %arg2: memref<128x512xf32, #tpu.memory_space<vmem>>, %arg3: memref<1x512xf32, #tpu.memory_space<vmem>>, %arg4: memref<512x128xf32, #tpu.memory_space<vmem>>, %arg5: memref<1x128xf32, #tpu.memory_space<vmem>>, %arg6: memref<128x128xf32, #tpu.memory_space<vmem>>, %arg7: memref<1x128xf32, #tpu.memory_space<vmem>>, %arg8: memref<256x128xf32, #tpu.memory_space<vmem>>) attributes {dimension_semantics = [#tpu.dimension_semantics<parallel>], iteration_bounds = array<i64: 1>, scalar_prefetch = 0 : i64, scratch_operands = 0 : i64, tpu.core_type = #tpu.core_type<tc>, window_params = [{transform_indices = @transform_0, window_bounds = array<i64: 256, 128>}, {pipeline_mode = #tpu.pipeline_mode<synchronous>, transform_indices = @transform_1, window_bounds = array<i64: 128, 512>}, {pipeline_mode = #tpu.pipeline_mode<synchronous>, transform_indices = @transform_2, window_bounds = array<i64: 1, 512>}, {pipeline_mode = #tpu.pipeline_mode<synchronous>, transform_indices = @transform_3, window_bounds = array<i64: 512, 128>}, {pipeline_mode = #tpu.pipeline_mode<synchronous>, transform_indices = @transform_4, window_bounds = array<i64: 1, 128>}, {pipeline_mode = #tpu.pipeline_mode<synchronous>, transform_indices = @transform_5, window_bounds = array<i64: 128, 128>}, {pipeline_mode = #tpu.pipeline_mode<synchronous>, transform_indices = @transform_6, window_bounds = array<i64: 1, 128>}, {transform_indices = @transform_7, window_bounds = array<i64: 256, 128>}]} {
    %c0 = arith.constant 0 : index
    %c0_0 = arith.constant 0 : index
    %0 = vector.load %arg1[%c0, %c0_0] : memref<256x128xf32, #tpu.memory_space<vmem>>, vector<256x128xf32>
    %c0_1 = arith.constant 0 : index
    %c0_2 = arith.constant 0 : index
    %1 = vector.load %arg2[%c0_1, %c0_2] : memref<128x512xf32, #tpu.memory_space<vmem>>, vector<128x512xf32>
    %cst = arith.constant dense<0.000000e+00> : vector<256x512xf32>
    %2 = tpu.matmul %0, %1, %cst {dimension_numbers = #tpu.dot_dimension_numbers<[1], [0], [0], [1], [0, 0, 1, 1], [], []>} : vector<256x128xf32>, vector<128x512xf32>, vector<256x512xf32> -> vector<256x512xf32>
    %c0_3 = arith.constant 0 : index
    %c0_4 = arith.constant 0 : index
    %3 = vector.load %arg3[%c0_3, %c0_4] : memref<1x512xf32, #tpu.memory_space<vmem>>, vector<1x512xf32>
    %4 = vector.broadcast %3 : vector<1x512xf32> to vector<256x512xf32>
    %5 = arith.addf %2, %4 : vector<256x512xf32>
    %cst_5 = arith.constant 0.000000e+00 : f32
    %6 = vector.broadcast %cst_5 : f32 to vector<256x512xf32>
    %7 = arith.maximumf %5, %6 : vector<256x512xf32>
    %c0_6 = arith.constant 0 : index
    %c0_7 = arith.constant 0 : index
    %8 = vector.load %arg4[%c0_6, %c0_7] : memref<512x128xf32, #tpu.memory_space<vmem>>, vector<512x128xf32>
    %cst_8 = arith.constant dense<0.000000e+00> : vector<256x128xf32>
    %9 = tpu.matmul %7, %8, %cst_8 {dimension_numbers = #tpu.dot_dimension_numbers<[1], [0], [0], [1], [0, 0, 1, 1], [], []>} : vector<256x512xf32>, vector<512x128xf32>, vector<256x128xf32> -> vector<256x128xf32>
    %c0_9 = arith.constant 0 : index
    %c0_10 = arith.constant 0 : index
    %10 = vector.load %arg5[%c0_9, %c0_10] : memref<1x128xf32, #tpu.memory_space<vmem>>, vector<1x128xf32>
    %11 = vector.broadcast %10 : vector<1x128xf32> to vector<256x128xf32>
    %12 = arith.addf %9, %11 : vector<256x128xf32>
    %cst_11 = arith.constant 0.000000e+00 : f32
    %13 = vector.broadcast %cst_11 : f32 to vector<256x128xf32>
    %14 = arith.maximumf %12, %13 : vector<256x128xf32>
    %c0_12 = arith.constant 0 : index
    %c0_13 = arith.constant 0 : index
    %15 = vector.load %arg6[%c0_12, %c0_13] : memref<128x128xf32, #tpu.memory_space<vmem>>, vector<128x128xf32>
    %cst_14 = arith.constant dense<0.000000e+00> : vector<256x128xf32>
    %16 = tpu.matmul %14, %15, %cst_14 {dimension_numbers = #tpu.dot_dimension_numbers<[1], [0], [0], [1], [0, 0, 1, 1], [], []>} : vector<256x128xf32>, vector<128x128xf32>, vector<256x128xf32> -> vector<256x128xf32>
    %c0_15 = arith.constant 0 : index
    %c0_16 = arith.constant 0 : index
    %17 = vector.load %arg7[%c0_15, %c0_16] : memref<1x128xf32, #tpu.memory_space<vmem>>, vector<1x128xf32>
    %18 = vector.broadcast %17 : vector<1x128xf32> to vector<256x128xf32>
    %19 = arith.addf %16, %18 : vector<256x128xf32>
    %cst_17 = arith.constant dense<0xFF800000> : vector<256xf32>
    %20 = vector.multi_reduction <maximumf>, %19, %cst_17 [1] : vector<256x128xf32> to vector<256xf32>
    %21 = vector.shape_cast %20 : vector<256xf32> to vector<256x1xf32>
    %22 = vector.broadcast %21 : vector<256x1xf32> to vector<256x128xf32>
    %23 = arith.subf %19, %22 : vector<256x128xf32>
    %24 = math.exp %23 : vector<256x128xf32>
    %cst_18 = arith.constant dense<0.000000e+00> : vector<256xf32>
    %25 = vector.multi_reduction <add>, %24, %cst_18 [1] : vector<256x128xf32> to vector<256xf32>
    %26 = vector.shape_cast %25 : vector<256xf32> to vector<256x1xf32>
    %cst_19 = arith.constant 1.000000e+00 : f32
    %27 = vector.broadcast %cst_19 : f32 to vector<256x1xf32>
    %28 = arith.divf %27, %26 : vector<256x1xf32>
    %29 = vector.broadcast %28 : vector<256x1xf32> to vector<256x128xf32>
    %30 = arith.mulf %24, %29 : vector<256x128xf32>
    %c0_20 = arith.constant 0 : index
    %c0_21 = arith.constant 0 : index
    %31 = vector.load %arg8[%c0_20, %c0_21] : memref<256x128xf32, #tpu.memory_space<vmem>>, vector<256x128xf32>
    tpu.vector_store %arg8[%c0_20, %c0_21], %30 {strides = array<i32>} : memref<256x128xf32, #tpu.memory_space<vmem>>, vector<256x128xf32>,
    return
  }
  func.func @transform_0(%arg0: i32) -> (i32, i32) {
    %c0_i32 = arith.constant 0 : i32
    %c0_i32_0 = arith.constant 0 : i32
    return %arg0, %c0_i32 : i32, i32
  }
  func.func @transform_1(%arg0: i32) -> (i32, i32) {
    %c0_i32 = arith.constant 0 : i32
    %c0_i32_0 = arith.constant 0 : i32
    %c0_i32_1 = arith.constant 0 : i32
    return %c0_i32, %c0_i32_0 : i32, i32
  }
  func.func @transform_2(%arg0: i32) -> (i32, i32) {
    %c0_i32 = arith.constant 0 : i32
    %c0_i32_0 = arith.constant 0 : i32
    %c0_i32_1 = arith.constant 0 : i32
    return %c0_i32, %c0_i32_0 : i32, i32
  }
  func.func @transform_3(%arg0: i32) -> (i32, i32) {
    %c0_i32 = arith.constant 0 : i32
    %c0_i32_0 = arith.constant 0 : i32
    %c0_i32_1 = arith.constant 0 : i32
    return %c0_i32, %c0_i32_0 : i32, i32
  }
  func.func @transform_4(%arg0: i32) -> (i32, i32) {
    %c0_i32 = arith.constant 0 : i32
    %c0_i32_0 = arith.constant 0 : i32
    %c0_i32_1 = arith.constant 0 : i32
    return %c0_i32, %c0_i32_0 : i32, i32
  }
  func.func @transform_5(%arg0: i32) -> (i32, i32) {
    %c0_i32 = arith.constant 0 : i32
    %c0_i32_0 = arith.constant 0 : i32
    %c0_i32_1 = arith.constant 0 : i32
    return %c0_i32, %c0_i32_0 : i32, i32
  }
  func.func @transform_6(%arg0: i32) -> (i32, i32) {
    %c0_i32 = arith.constant 0 : i32
    %c0_i32_0 = arith.constant 0 : i32
    %c0_i32_1 = arith.constant 0 : i32
    return %c0_i32, %c0_i32_0 : i32, i32
  }
  func.func @transform_7(%arg0: i32) -> (i32, i32) {
    %c0_i32 = arith.constant 0 : i32
    %c0_i32_0 = arith.constant 0 : i32
    return %arg0, %c0_i32 : i32, i32
  }
}

</mosaic_0001>

<bundles_post_ra>
// kernel: tpu_custom_call.1
= control target key start
LH: loop header
LB: loop body
LE: loop exit
PB: predicated region body
PF: predicated region fallthrough
CT: control target
= control target key end

     0   :  { %12 = vsyncpa [#allocation3], 0  ;;  %s3604_s0 = inlined_call_operand.hbm [shape: f32[256,128], index: 0, kind: input, shape index: {}]   ;;  %s3605_s1 = inlined_call_operand.hbm [shape: f32[128,512], index: 1, kind: input, shape index: {}]   ;;  %s3606_s2 = inlined_call_operand.vmem [shape: f32[1,512], index: 2, kind: input, shape index: {}]   ;;  %s3607_s3 = inlined_call_operand.hbm [shape: f32[512,128], index: 3, kind: input, shape index: {}]   ;;  %s3608_s4 = inlined_call_operand.vmem [shape: f32[1,128], index: 4, kind: input, shape index: {}]   ;;  %s3609_s5 = inlined_call_operand.hbm [shape: f32[128,128], index: 5, kind: input, shape index: {}]   ;;  %s3610_s6 = inlined_call_operand.vmem [shape: f32[1,128], index: 6, kind: input, shape index: {}]   ;;  %s3611_s7 = inlined_call_operand.hbm [shape: f32[256,128], index: 7, kind: output, shape index: {}]  }
   0x1   :  { %13 = vsyncpa [#allocation6], 0 }
   0x2   :  { %14 = vsyncpa [#allocation9], 0 }
   0x3   :  { %15 = vsyncpa [#allocation4], 0  ;;  %s2697_s24 = smov [#allocation5]   ;;  %s2579_s28 = scalar_lea.hbm %s3605_s1, 8192 }
   0x4   :  { %s33_s25 = sshll.u32 %s2697_s24, 4  ;;  %p2580_p0 = scmp.ne.s32.totalorder %s3605_s1, %s2579_s28  ;;  %s34_s25 = int_to_ptr.vmem [resolvable:$true] %s33_s25 }
   0x5   :  { %p2583_p1 = scmp.lt.u32.totalorder %s2579_s28, %s3605_s1 }
   0x7   :  { %p2585_p2 = pnand %p2583_p1, %p2580_p0 }
   0x9   :  { %2588 = shalt.err (!%p2585_p2)
}
   0xa   :  { %s2589_s10 = scalar_lea.vmem %s34_s25, 8192  ;;  %p2594_p4 = scmp.lt.s32.totalorder %s34_s25, %s34_s25 }
   0xb   :  { %p2590_p3 = scmp.ne.s32.totalorder %s34_s25, %s2589_s10  ;;  %p2595_p5 = scmp.lt.s32.totalorder %s2589_s10, %s2589_s10 }
   0xd   :  { %p2596_p6 = por %p2595_p5, %p2594_p4 }
   0xf   :  { %p2597_p7 = pnand %p2596_p6, %p2590_p3 }
  0x11   :  { %2600 = shalt.err (!%p2597_p7)
}
  0x12   :  { %s2698_s11 = smov 512   ;;  %s2699_s12 = smov 32  }
  0x13   :  { %39 = dma.hbm_to_vmem [thread:$0]  %s3605_s1, 8192, %s34_s25, [#allocation6], %s2698_s11, %s2698_s11, %s2699_s12  }
  0x14   :  { %s2700_s15 = smov [#allocation2]   ;;  %s2601_s19 = scalar_lea.hbm %s3604_s0, 4096 }
  0x15   :  { %s21_s16 = sshll.u32 %s2700_s15, 4  ;;  %p2602_p8 = scmp.ne.s32.totalorder %s3604_s0, %s2601_s19  ;;  %s22_s16 = int_to_ptr.vmem [resolvable:$true] %s21_s16 }
  0x16   :  { %p2605_p9 = scmp.lt.u32.totalorder %s2601_s19, %s3604_s0 }
  0x18   :  { %p2607_p10 = pnand %p2605_p9, %p2602_p8 }
  0x1a   :  { %2610 = shalt.err (!%p2607_p10)
}
  0x1b   :  { %s2611_s24 = scalar_lea.vmem %s22_s16, 4096  ;;  %p2616_p12 = scmp.lt.s32.totalorder %s22_s16, %s22_s16 }
  0x1c   :  { %p2612_p11 = scmp.ne.s32.totalorder %s22_s16, %s2611_s24  ;;  %p2617_p13 = scmp.lt.s32.totalorder %s2611_s24, %s2611_s24 }
  0x1e   :  { %p2618_p0 = por %p2617_p13, %p2616_p12 }
  0x20   :  { %p2619_p1 = pnand %p2618_p0, %p2612_p11 }
  0x22   :  { %2622 = shalt.err (!%p2619_p1)
}
  0x23   :  { %s2701_s1 = smov 128   ;;  %s2702_s25 = smov 8  }
  0x24   :  { %27 = dma.hbm_to_vmem [thread:$0]  %s3604_s0, 4096, %s22_s16, [#allocation3], %s2701_s1, %s2701_s1, %s2702_s25  }
  0x25   :  { %s2703_s28 = smov [#allocation7]   ;;  %s2704_s30 = smov [#allocation8]  }
  0x26   :  { %s47_s29 = sshll.u32 %s2703_s28, 4  ;;  %s61_s8 = sshll.u32 %s2704_s30, 4  ;;  %s48_s29 = int_to_ptr.vmem [resolvable:$true] %s47_s29  ;;  %s2775_s8 = int_to_ptr.vmem [resolvable:$true] %s61_s8 }
  0x27   :  { %s2623_s11 = scalar_lea.hbm %s3607_s3, 8192 }
  0x28   :  { %p2624_p2 = scmp.ne.s32.totalorder %s3607_s3, %s2623_s11  ;;  %p2627_p3 = scmp.lt.u32.totalorder %s2623_s11, %s3607_s3 }
  0x2a   :  { %p2629_p4 = pnand %p2627_p3, %p2624_p2 }
  0x2c   :  { %2632 = shalt.err (!%p2629_p4)
}
  0x2d   :  { %s2633_s0 = scalar_lea.vmem %s48_s29, 8192  ;;  %p2638_p6 = scmp.lt.s32.totalorder %s48_s29, %s48_s29 }
  0x2e   :  { %p2634_p5 = scmp.ne.s32.totalorder %s48_s29, %s2633_s0  ;;  %p2639_p7 = scmp.lt.s32.totalorder %s2633_s0, %s2633_s0 }
  0x30   :  { %p2640_p8 = por %p2639_p7, %p2638_p6 }
  0x32   :  { %p2641_p9 = pnand %p2640_p8, %p2634_p5 }
  0x34   :  { %2644 = shalt.err (!%p2641_p9)
}
  0x35   :  { %53 = dma.hbm_to_vmem [thread:$0]  %s3607_s3, 8192, %s48_s29, [#allocation6], %s2701_s1, %s2701_s1, %s2702_s25  }
  0x36   :  { %s2645_s20 = scalar_lea.hbm %s3609_s5, 2048 }
  0x37   :  { %p2646_p10 = scmp.ne.s32.totalorder %s3609_s5, %s2645_s20  ;;  %p2649_p11 = scmp.lt.u32.totalorder %s2645_s20, %s3609_s5 }
  0x39   :  { %p2651_p12 = pnand %p2649_p11, %p2646_p10 }
  0x3b   :  { %2654 = shalt.err (!%p2651_p12)
}
  0x3c   :  { %s2655_s26 = scalar_lea.vmem %s2775_s8, 2048  ;;  %p2660_p0 = scmp.lt.s32.totalorder %s2775_s8, %s2775_s8 }
  0x3d   :  { %p2656_p13 = scmp.ne.s32.totalorder %s2775_s8, %s2655_s26  ;;  %p2661_p1 = scmp.lt.s32.totalorder %s2655_s26, %s2655_s26 }
  0x3f   :  { %p2662_p2 = por %p2661_p1, %p2660_p0 }
  0x41   :  { %p2663_p3 = pnand %p2662_p2, %p2656_p13 }
  0x43   :  { %2666 = shalt.err (!%p2663_p3)
}
  0x44   :  { %67 = dma.hbm_to_vmem [thread:$0]  %s3609_s5, 2048, %s2775_s8, [#allocation9], %s2701_s1, %s2701_s1, %s2702_s25  }
  0x45   :  { %2689 = dma.done.wait [#allocation3], 4096  }
  0x46   :  { %2690 = vsyncadd [#allocation3], 4294963200 }
  0x47   :  { %2691 = dma.done.wait [#allocation6], 16384  }
  0x48   :  { %2692 = vsyncadd [#allocation6], 4294950912 }
  0x49   :  { %2693 = dma.done.wait [#allocation9], 2048  }
  0x4a   :  { %2694 = vsyncadd [#allocation9], 4294965248  ;;  %v2705_v0 = vmov 0.0   ;;  %v115_v1 = vld [vmem:[#allocation5 + $0x8] sm:$0xff]  ;;  %v114_v3 = vld [vmem:[#allocation5] sm:$0xff] }
  0x4b   :  { %264 = vmatprep.mubr.f32.mxu0 %v2705_v0  ;;  %521 = vmatprep.mubr.f32.mxu1 %v2705_v0  ;;  %v119_v2 = vld [vmem:[#allocation5 + $0x28] sm:$0xff]  ;;  %v118_v5 = vld [vmem:[#allocation5 + $0x20] sm:$0xff]  ;;  %v117_v6 = vld [vmem:[#allocation5 + $0x18] sm:$0xff] }
  0x4c   :  { %v2144_v4 = vpack.c.bf16 %v119_v2, %v115_v1  ;;  %v121_v7 = vld [vmem:[#allocation5 + $0x38] sm:$0xff]  ;;  %v2146_v8 = vpack.c.bf16 %v118_v5, %v114_v3  ;;  %v116_v10 = vld [vmem:[#allocation5 + $0x10] sm:$0xff]  ;;  %v123_v12 = vld [vmem:[#allocation5 + $0x48] sm:$0xff] }
  0x4d   :  { %v2176_v9 = vpack.c.bf16 %v121_v7, %v117_v6  ;;  %v120_v11 = vld [vmem:[#allocation5 + $0x30] sm:$0xff]  ;;  %v127_v14 = vld [vmem:[#allocation5 + $0x68] sm:$0xff]  ;;  %v122_v15 = vld [vmem:[#allocation5 + $0x40] sm:$0xff] }
  0x4e   :  { %2145 = vmatprep.subr.bf16.mxu0 %v2144_v4  ;;  %v2178_v13 = vpack.c.bf16 %v120_v11, %v116_v10  ;;  %v126_v16 = vld [vmem:[#allocation5 + $0x60] sm:$0xff]  ;;  %v2148_v17 = vpack.c.bf16 %v127_v14, %v123_v12  ;;  %v125_v19 = vld [vmem:[#allocation5 + $0x58] sm:$0xff]  ;;  %v124_v21 = vld [vmem:[#allocation5 + $0x50] sm:$0xff] }
  0x4f   :  { %2147 = vmatpush1.bf16.msra.mxu0 %v2146_v8  ;;  %2177 = vmatprep.subr.bf16.mxu1 %v2176_v9  ;;  %v2150_v18 = vpack.c.bf16 %v126_v16, %v122_v15  ;;  %v129_v20 = vld [vmem:[#allocation5 + $0x78] sm:$0xff]  ;;  %v128_v23 = vld [vmem:[#allocation5 + $0x70] sm:$0xff]  ;;  %v131_v24 = vld [vmem:[#allocation5 + $0x88] sm:$0xff] }
  0x50   :  { %2179 = vmatpush1.bf16.msra.mxu1 %v2178_v13  ;;  %v2180_v22 = vpack.c.bf16 %v129_v20, %v125_v19  ;;  %v135_v25 = vld [vmem:[#allocation5 + $0xa8] sm:$0xff]  ;;  %2149 = vmatprep.subr.bf16.mxu0 %v2148_v17  ;;  %v2182_v26 = vpack.c.bf16 %v128_v23, %v124_v21  ;;  %v130_v28 = vld [vmem:[#allocation5 + $0x80] sm:$0xff]  ;;  %v133_v30 = vld [vmem:[#allocation5 + $0x98] sm:$0xff] }
  0x51   :  { %v2152_v27 = vpack.c.bf16 %v135_v25, %v131_v24  ;;  %v134_v29 = vld [vmem:[#allocation5 + $0xa0] sm:$0xff]  ;;  %v137_v31 = vld [vmem:[#allocation5 + $0xb8] sm:$0xff]  ;;  %v132_v32 = vld [vmem:[#allocation5 + $0x90] sm:$0xff] }
  0x52   :  { %2181 = vmatprep.subr.bf16.mxu1 %v2180_v22  ;;  %v136_v33 = vld [vmem:[#allocation5 + $0xb0] sm:$0xff]  ;;  %v2154_v34 = vpack.c.bf16 %v134_v29, %v130_v28  ;;  %v2184_v35 = vpack.c.bf16 %v137_v31, %v133_v30  ;;  %v139_v36 = vld [vmem:[#allocation5 + $0xc8] sm:$0xff]  ;;  %v138_v38 = vld [vmem:[#allocation5 + $0xc0] sm:$0xff] }
  0x53   :  { %2151 = vmatpush1.bf16.msra.mxu0 %v2150_v18  ;;  %v143_v37 = vld [vmem:[#allocation5 + $0xe8] sm:$0xff]  ;;  %v2186_v39 = vpack.c.bf16 %v136_v33, %v132_v32  ;;  %v142_v41 = vld [vmem:[#allocation5 + $0xe0] sm:$0xff]  ;;  %v141_v42 = vld [vmem:[#allocation5 + $0xd8] sm:$0xff] }
  0x54   :  { %2183 = vmatpush1.bf16.msra.mxu1 %v2182_v26  ;;  %2153 = vmatprep.subr.bf16.mxu0 %v2152_v27  ;;  %v2156_v40 = vpack.c.bf16 %v143_v37, %v139_v36  ;;  %v145_v43 = vld [vmem:[#allocation5 + $0xf8] sm:$0xff]  ;;  %v140_v45 = vld [vmem:[#allocation5 + $0xd0] sm:$0xff]  ;;  %v147_v47 = vld [vmem:[#allocation5 + $0x108] sm:$0xff]  ;;  %v2158_v49 = vpack.c.bf16 %v142_v41, %v138_v38  ;;  %v2706_v37 = vmov 0.0|0.0  }
  0x55   :  { %2185 = vmatprep.subr.bf16.mxu1 %v2184_v35  ;;  %v2188_v44 = vpack.c.bf16 %v145_v43, %v141_v42  ;;  %v144_v46 = vld [vmem:[#allocation5 + $0xf0] sm:$0xff]  ;;  %v151_v48 = vld [vmem:[#allocation5 + $0x128] sm:$0xff]  ;;  %v149_v50 = vld [vmem:[#allocation5 + $0x118] sm:$0xff] }
  0x56   :  { %v153_v51 = vld [vmem:[#allocation5 + $0x138] sm:$0xff]  ;;  %v2190_v52 = vpack.c.bf16 %v144_v46, %v140_v45  ;;  %v2160_v53 = vpack.c.bf16 %v151_v48, %v147_v47  ;;  %v146_v54 = vld [vmem:[#allocation5 + $0x100] sm:$0xff]  ;;  %v148_v56 = vld [vmem:[#allocation5 + $0x110] sm:$0xff] }
  0x57   :  { %2155 = vmatpush1.bf16.msra.mxu0 %v2154_v34  ;;  %v150_v55 = vld [vmem:[#allocation5 + $0x120] sm:$0xff]  ;;  %v2192_v57 = vpack.c.bf16 %v153_v51, %v149_v50  ;;  %v152_v58 = vld [vmem:[#allocation5 + $0x130] sm:$0xff]  ;;  %v155_v59 = vld [vmem:[#allocation5 + $0x148] sm:$0xff] }
  0x58   :  { %2187 = vmatpush1.bf16.msra.mxu1 %v2186_v39  ;;  %2157 = vmatprep.subr.bf16.mxu0 %v2156_v40  ;;  %v159_v60 = vld [vmem:[#allocation5 + $0x168] sm:$0xff]  ;;  %v157_v61 = vld [vmem:[#allocation5 + $0x158] sm:$0xff]  ;;  %v2162_v63 = vpack.c.bf16 %v150_v55, %v146_v54  ;;  %v2194_v1 = vpack.c.bf16 %v152_v58, %v148_v56  ;;  %v154_v3 = vld [vmem:[#allocation5 + $0x140] sm:$0xff] }
  0x59   :  { %2189 = vmatprep.subr.bf16.mxu1 %v2188_v44  ;;  %v161_v62 = vld [vmem:[#allocation5 + $0x178] sm:$0xff]  ;;  %v2164_v2 = vpack.c.bf16 %v159_v60, %v155_v59  ;;  %v158_v4 = vld [vmem:[#allocation5 + $0x160] sm:$0xff]  ;;  %v156_v5 = vld [vmem:[#allocation5 + $0x150] sm:$0xff] }
  0x5a   :  { %v2196_v6 = vpack.c.bf16 %v161_v62, %v157_v61  ;;  %v160_v7 = vld [vmem:[#allocation5 + $0x170] sm:$0xff]  ;;  %v163_v8 = vld [vmem:[#allocation5 + $0x188] sm:$0xff]  ;;  %v165_v10 = vld [vmem:[#allocation5 + $0x198] sm:$0xff]  ;;  %v2166_v12 = vpack.c.bf16 %v158_v4, %v154_v3 }
  0x5b   :  { %2159 = vmatpush1.bf16.msra.mxu0 %v2158_v49  ;;  %v167_v9 = vld [vmem:[#allocation5 + $0x1a8] sm:$0xff]  ;;  %v169_v11 = vld [vmem:[#allocation5 + $0x1b8] sm:$0xff]  ;;  %v2198_v13 = vpack.c.bf16 %v160_v7, %v156_v5  ;;  %v162_v15 = vld [vmem:[#allocation5 + $0x180] sm:$0xff] }
  0x5c   :  { %2191 = vmatpush1.bf16.msra.mxu1 %v2190_v52  ;;  %2161 = vmatprep.subr.bf16.mxu0 %v2160_v53  ;;  %v2168_v14 = vpack.c.bf16 %v167_v9, %v163_v8  ;;  %v166_v16 = vld [vmem:[#allocation5 + $0x1a0] sm:$0xff]  ;;  %v164_v17 = vld [vmem:[#allocation5 + $0x190] sm:$0xff]  ;;  %v2200_v18 = vpack.c.bf16 %v169_v11, %v165_v10  ;;  %v171_v20 = vld [vmem:[#allocation5 + $0x1c8] sm:$0xff] }
  0x5d   :  { %2193 = vmatprep.subr.bf16.mxu1 %v2192_v57  ;;  %v168_v19 = vld [vmem:[#allocation5 + $0x1b0] sm:$0xff]  ;;  %v175_v21 = vld [vmem:[#allocation5 + $0x1e8] sm:$0xff]  ;;  %v173_v22 = vld [vmem:[#allocation5 + $0x1d8] sm:$0xff]  ;;  %v2170_v24 = vpack.c.bf16 %v166_v16, %v162_v15 }
  0x5e   :  { %v177_v23 = vld [vmem:[#allocation5 + $0x1f8] sm:$0xff]  ;;  %v2202_v25 = vpack.c.bf16 %v168_v19, %v164_v17  ;;  %v2172_v26 = vpack.c.bf16 %v175_v21, %v171_v20  ;;  %v170_v27 = vld [vmem:[#allocation5 + $0x1c0] sm:$0xff]  ;;  %v172_v30 = vld [vmem:[#allocation5 + $0x1d0] sm:$0xff] }
  0x5f   :  { %2163 = vmatpush1.bf16.msra.mxu0 %v2162_v63  ;;  %v174_v28 = vld [vmem:[#allocation5 + $0x1e0] sm:$0xff]  ;;  %v2204_v29 = vpack.c.bf16 %v177_v23, %v173_v22  ;;  %v176_v31 = vld [vmem:[#allocation5 + $0x1f0] sm:$0xff]  ;;  %v843_v35 = vld [vmem:[#allocation7 + $0x8] sm:$0xff] }
  0x60   :  { %2195 = vmatpush1.bf16.msra.mxu1 %v2194_v1  ;;  %2165 = vmatprep.subr.bf16.mxu0 %v2164_v2  ;;  %v2174_v32 = vpack.c.bf16 %v174_v28, %v170_v27  ;;  %v2206_v33 = vpack.c.bf16 %v176_v31, %v172_v30  ;;  %v842_v34 = vld [vmem:[#allocation7] sm:$0xff]  ;;  %v844_v39 = vld [vmem:[#allocation7 + $0x10] sm:$0xff]  ;;  %v845_v40 = vld [vmem:[#allocation7 + $0x18] sm:$0xff] }
  0x61   :  { %2197 = vmatprep.subr.bf16.mxu1 %v2196_v6  ;;  %v82_v36 = vld [vmem:[#allocation2] sm:$0xff]  ;;  %v2209_v38 = vpack.c.bf16 %v843_v35, %v842_v34  ;;  %v83_v41 = vld [vmem:[#allocation2 + $0x8] sm:$0xff]  ;;  %v2212_v42 = vpack.c.bf16 %v845_v40, %v844_v39  ;;  %v84_v45 = vld [vmem:[#allocation2 + $0x10] sm:$0xff] }
  0x62   :  { %v846_v43 = vld [vmem:[#allocation7 + $0x20] sm:$0xff]  ;;  %v847_v44 = vld [vmem:[#allocation7 + $0x28] sm:$0xff]  ;;  %v848_v49 = vld [vmem:[#allocation7 + $0x30] sm:$0xff] }
  0x63   :  { %2167 = vmatpush1.bf16.msra.mxu0 %v2166_v12  ;;  %v874_v46 = vld [vmem:[#allocation7 + $0x100] sm:$0xff]  ;;  %v2215_v47 = vpack.c.bf16 %v847_v44, %v846_v43  ;;  %v875_v48 = vld [vmem:[#allocation7 + $0x108] sm:$0xff]  ;;  %v849_v50 = vld [vmem:[#allocation7 + $0x38] sm:$0xff] }
  0x64   :  { %2199 = vmatpush1.bf16.msra.mxu1 %v2198_v13  ;;  %2169 = vmatprep.subr.bf16.mxu0 %v2168_v14  ;;  %v2822_v51 = vpack.c.bf16 %v875_v48, %v874_v46  ;;  %v876_v52 = vld [vmem:[#allocation7 + $0x110] sm:$0xff]  ;;  %v877_v53 = vld [vmem:[#allocation7 + $0x118] sm:$0xff]  ;;  %v2218_v55 = vpack.c.bf16 %v849_v50, %v848_v49  ;;  %v850_v56 = vld [vmem:[#allocation7 + $0x40] sm:$0xff] }
  0x65   :  { %2201 = vmatprep.subr.bf16.mxu1 %v2200_v18  ;;  %v85_v54 = vld [vmem:[#allocation2 + $0x18] sm:$0xff]  ;;  %v851_v57 = vld [vmem:[#allocation7 + $0x48] sm:$0xff]  ;;  %v2828_v58 = vpack.c.bf16 %v877_v53, %v876_v52  ;;  %v878_v59 = vld [vmem:[#allocation7 + $0x120] sm:$0xff] }
  0x66   :  { %v879_v60 = vld [vmem:[#allocation7 + $0x128] sm:$0xff]  ;;  %v86_v61 = vld [vmem:[#allocation2 + $0x20] sm:$0xff]  ;;  %v2221_v62 = vpack.c.bf16 %v851_v57, %v850_v56  ;;  %v852_v63 = vld [vmem:[#allocation7 + $0x50] sm:$0xff] }
  0x67   :  { %2171 = vmatpush1.bf16.msra.mxu0 %v2170_v24  ;;  %v853_v1 = vld [vmem:[#allocation7 + $0x58] sm:$0xff]  ;;  %v2835_v2 = vpack.c.bf16 %v879_v60, %v878_v59  ;;  %v880_v3 = vld [vmem:[#allocation7 + $0x130] sm:$0xff]  ;;  %v87_v5 = vld [vmem:[#allocation2 + $0x28] sm:$0xff] }
  0x68   :  { %2203 = vmatpush1.bf16.msra.mxu1 %v2202_v25  ;;  %2173 = vmatprep.subr.bf16.mxu0 %v2172_v26  ;;  %v881_v4 = vld [vmem:[#allocation7 + $0x138] sm:$0xff]  ;;  %v2224_v6 = vpack.c.bf16 %v853_v1, %v852_v63  ;;  %v854_v7 = vld [vmem:[#allocation7 + $0x60] sm:$0xff]  ;;  %v855_v8 = vld [vmem:[#allocation7 + $0x68] sm:$0xff] }
  0x69   :  { %2205 = vmatprep.subr.bf16.mxu1 %v2204_v29  ;;  %v2842_v9 = vpack.c.bf16 %v881_v4, %v880_v3  ;;  %v882_v10 = vld [vmem:[#allocation7 + $0x140] sm:$0xff]  ;;  %v883_v11 = vld [vmem:[#allocation7 + $0x148] sm:$0xff]  ;;  %v88_v12 = vld [vmem:[#allocation2 + $0x30] sm:$0xff]  ;;  %v2227_v13 = vpack.c.bf16 %v855_v8, %v854_v7 }
  0x6a   :  { %v856_v14 = vld [vmem:[#allocation7 + $0x70] sm:$0xff]  ;;  %v857_v15 = vld [vmem:[#allocation7 + $0x78] sm:$0xff]  ;;  %v2849_v16 = vpack.c.bf16 %v883_v11, %v882_v10  ;;  %v858_v21 = vld [vmem:[#allocation7 + $0x80] sm:$0xff] }
  0x6b   :  { %2175 = vmatpush1.bf16.msra.mxu0 %v2174_v32  ;;  %v884_v17 = vld [vmem:[#allocation7 + $0x150] sm:$0xff]  ;;  %v885_v18 = vld [vmem:[#allocation7 + $0x158] sm:$0xff]  ;;  %v2230_v20 = vpack.c.bf16 %v857_v15, %v856_v14  ;;  %v859_v22 = vld [vmem:[#allocation7 + $0x88] sm:$0xff] }
  0x6c   :  { %2207 = vmatpush1.bf16.msra.mxu1 %v2206_v33  ;;  %2208 = vmatprep.subr.bf16.mxu0 %v2706_v37  ;;  %v89_v19 = vld [vmem:[#allocation2 + $0x38] sm:$0xff]  ;;  %v2856_v23 = vpack.c.bf16 %v885_v18, %v884_v17  ;;  %v90_v24 = vld [vmem:[#allocation2 + $0x40] sm:$0xff]  ;;  %v2233_v25 = vpack.c.bf16 %v859_v22, %v858_v21  ;;  %v860_v26 = vld [vmem:[#allocation7 + $0x90] sm:$0xff] }
  0x6d   :  { %2336 = vmatprep.subr.bf16.mxu1 %v2706_v37  ;;  %v861_v27 = vld [vmem:[#allocation7 + $0x98] sm:$0xff]  ;;  %v91_v28 = vld [vmem:[#allocation2 + $0x48] sm:$0xff]  ;;  %v862_v30 = vld [vmem:[#allocation7 + $0xa0] sm:$0xff] }
  0x6e   :  { %265 = vmatmul.mubr.f32.vlgmr.msra.gmra.mrb[0].mxu0 %v82_v36  ;;  %v2236_v29 = vpack.c.bf16 %v861_v27, %v860_v26  ;;  %v863_v31 = vld [vmem:[#allocation7 + $0xa8] sm:$0xff]  ;;  %v92_v32 = vld [vmem:[#allocation2 + $0x50] sm:$0xff]  ;;  %v865_v35 = vld [vmem:[#allocation7 + $0xb8] sm:$0xff] }
  0x6f   :  { %522 = vmatmul.mubr.f32.vlgmr.msra.gmra.mrb[0].mxu1 %v82_v36  ;;  %270 = vmatprep.mubr.f32.mxu0 %v2705_v0  ;;  %v2239_v33 = vpack.c.bf16 %v863_v31, %v862_v30  ;;  %v864_v34 = vld [vmem:[#allocation7 + $0xb0] sm:$0xff]  ;;  %v93_v36 = vld [vmem:[#allocation2 + $0x58] sm:$0xff]  ;;  %v866_v39 = vld [vmem:[#allocation7 + $0xc0] sm:$0xff] }
  0x70   :  { %527 = vmatprep.mubr.f32.mxu1 %v2705_v0  ;;  %2210 = vmatpush1.bf16.msra.mxu0 %v2209_v38  ;;  %v2242_v38 = vpack.c.bf16 %v865_v35, %v864_v34  ;;  %v867_v40 = vld [vmem:[#allocation7 + $0xc8] sm:$0xff]  ;;  %v868_v43 = vld [vmem:[#allocation7 + $0xd0] sm:$0xff]  ;;  %v869_v44 = vld [vmem:[#allocation7 + $0xd8] sm:$0xff] }
  0x71   :  { %2211 = vmatprep.subr.bf16.mxu0 %v2706_v37  ;;  %2352 = vmatpush1.bf16.msra.mxu1 %v2822_v51  ;;  %v2248_v46 = vpack.c.bf16 %v869_v44, %v868_v43  ;;  %v871_v48 = vld [vmem:[#allocation7 + $0xe8] sm:$0xff]  ;;  %v96_v49 = vld [vmem:[#allocation2 + $0x70] sm:$0xff]  ;;  %v873_v53 = vld [vmem:[#allocation7 + $0xf8] sm:$0xff] }
  0x72   :  { %271 = vmatmul.mubr.f32.gmra.mrb[2].mxu0 %v83_v41  ;;  %2337 = vmatprep.subr.bf16.mxu1 %v2706_v37  ;;  %v872_v52 = vld [vmem:[#allocation7 + $0xf0] sm:$0xff]  ;;  %v98_v56 = vld [vmem:[#allocation2 + $0x80] sm:$0xff]  ;;  %v99_v57 = vld [vmem:[#allocation2 + $0x88] sm:$0xff] }
  0x73   :  { %528 = vmatmul.mubr.f32.gmra.mrb[2].mxu1 %v83_v41  ;;  %276 = vmatprep.mubr.f32.mxu0 %v2705_v0  ;;  %v94_v41 = vld [vmem:[#allocation2 + $0x60] sm:$0xff]  ;;  %v100_v59 = vld [vmem:[#allocation2 + $0x90] sm:$0xff]  ;;  %v101_v60 = vld [vmem:[#allocation2 + $0x98] sm:$0xff] }
  0x74   :  { %533 = vmatprep.mubr.f32.mxu1 %v2705_v0  ;;  %2213 = vmatpush1.bf16.msra.mxu0 %v2212_v42  ;;  %v2245_v42 = vpack.c.bf16 %v867_v40, %v866_v39  ;;  %v886_v63 = vld [vmem:[#allocation7 + $0x160] sm:$0xff]  ;;  %v887_v1 = vld [vmem:[#allocation7 + $0x168] sm:$0xff]  ;;  %v104_v4 = vld [vmem:[#allocation2 + $0xb0] sm:$0xff] }
  0x75   :  { %2214 = vmatprep.subr.bf16.mxu0 %v2706_v37  ;;  %2353 = vmatpush1.bf16.msra.mxu1 %v2828_v58  ;;  %v2898_v3 = vpack.c.bf16 %v887_v1, %v886_v63  ;;  %v105_v8 = vld [vmem:[#allocation2 + $0xb8] sm:$0xff]  ;;  %v890_v10 = vld [vmem:[#allocation7 + $0x180] sm:$0xff]  ;;  %v891_v11 = vld [vmem:[#allocation7 + $0x188] sm:$0xff] }
  0x76   :  { %277 = vmatmul.mubr.f32.gmra.mrb[4].mxu0 %v84_v45  ;;  %2338 = vmatprep.subr.bf16.mxu1 %v2706_v37  ;;  %v892_v14 = vld [vmem:[#allocation7 + $0x190] sm:$0xff]  ;;  %v893_v15 = vld [vmem:[#allocation7 + $0x198] sm:$0xff]  ;;  %v107_v18 = vld [vmem:[#allocation2 + $0xc8] sm:$0xff] }
  0x77   :  { %534 = vmatmul.mubr.f32.gmra.mrb[4].mxu1 %v84_v45  ;;  %282 = vmatprep.mubr.f32.mxu0 %v2705_v0  ;;  %v95_v45 = vld [vmem:[#allocation2 + $0x68] sm:$0xff]  ;;  %v2916_v17 = vpack.c.bf16 %v893_v15, %v892_v14  ;;  %v108_v22 = vld [vmem:[#allocation2 + $0xd0] sm:$0xff]  ;;  %v109_v27 = vld [vmem:[#allocation2 + $0xd8] sm:$0xff] }
  0x78   :  { %539 = vmatprep.mubr.f32.mxu1 %v2705_v0  ;;  %2216 = vmatpush1.bf16.msra.mxu0 %v2215_v47  ;;  %v870_v47 = vld [vmem:[#allocation7 + $0xe0] sm:$0xff]  ;;  %v111_v35 = vld [vmem:[#allocation2 + $0xe8] sm:$0xff]  ;;  %v112_v40 = vld [vmem:[#allocation2 + $0xf0] sm:$0xff] }
  0x79   :  { %2217 = vmatprep.subr.bf16.mxu0 %v2706_v37  ;;  %2354 = vmatpush1.bf16.msra.mxu1 %v2835_v2  ;;  %v2251_v50 = vpack.c.bf16 %v871_v48, %v870_v47  ;;  %v110_v31 = vld [vmem:[#allocation2 + $0xe0] sm:$0xff]  ;;  %v113_v44 = vld [vmem:[#allocation2 + $0xf8] sm:$0xff] }
  0x7a   :  { %283 = vmatmul.mubr.f32.gmra.mrb[6].mxu0 %v85_v54  ;;  %2339 = vmatprep.subr.bf16.mxu1 %v2706_v37  ;;  %v2963_v48 = vld [vmem:[%s3606_s2] sm:$0xf] }
  0x7b   :  { %540 = vmatmul.mubr.f32.gmra.mrb[6].mxu1 %v85_v54  ;;  %288 = vmatprep.mubr.f32.mxu0 %v2705_v0  ;;  %v97_v54 = vld [vmem:[#allocation2 + $0x78] sm:$0xff] }
  0x7c   :  { %545 = vmatprep.mubr.f32.mxu1 %v2705_v0  ;;  %2219 = vmatpush1.bf16.msra.mxu0 %v2218_v55  ;;  %v2254_v55 = vpack.c.bf16 %v873_v53, %v872_v52 }
  0x7d   :  { %2220 = vmatprep.subr.bf16.mxu0 %v2706_v37  ;;  %2355 = vmatpush1.bf16.msra.mxu1 %v2842_v9 }
  0x7e   :  { %289 = vmatmul.mubr.f32.gmra.mrb[8].mxu0 %v86_v61  ;;  %2340 = vmatprep.subr.bf16.mxu1 %v2706_v37 }
  0x7f   :  { %546 = vmatmul.mubr.f32.gmra.mrb[8].mxu1 %v86_v61  ;;  %294 = vmatprep.mubr.f32.mxu0 %v2705_v0  ;;  %v102_v61 = vld [vmem:[#allocation2 + $0xa0] sm:$0xff] }
  0x80   :  { %551 = vmatprep.mubr.f32.mxu1 %v2705_v0  ;;  %2222 = vmatpush1.bf16.msra.mxu0 %v2221_v62  ;;  %v103_v62 = vld [vmem:[#allocation2 + $0xa8] sm:$0xff] }
  0x81   :  { %2223 = vmatprep.subr.bf16.mxu0 %v2706_v37  ;;  %2356 = vmatpush1.bf16.msra.mxu1 %v2849_v16 }
  0x82   :  { %295 = vmatmul.mubr.f32.gmra.mrb[10].mxu0 %v87_v5  ;;  %2341 = vmatprep.subr.bf16.mxu1 %v2706_v37 }
  0x83   :  { %552 = vmatmul.mubr.f32.gmra.mrb[10].mxu1 %v87_v5  ;;  %300 = vmatprep.mubr.f32.mxu0 %v2705_v0  ;;  %v888_v5 = vld [vmem:[#allocation7 + $0x170] sm:$0xff] }
  0x84   :  { %557 = vmatprep.mubr.f32.mxu1 %v2705_v0  ;;  %2225 = vmatpush1.bf16.msra.mxu0 %v2224_v6  ;;  %v889_v6 = vld [vmem:[#allocation7 + $0x178] sm:$0xff] }
  0x85   :  { %2226 = vmatprep.subr.bf16.mxu0 %v2706_v37  ;;  %2357 = vmatpush1.bf16.msra.mxu1 %v2856_v23  ;;  %v2904_v7 = vpack.c.bf16 %v889_v6, %v888_v5 }
  0x86   :  { %301 = vmatmul.mubr.f32.gmra.mrb[12].mxu0 %v88_v12  ;;  %2342 = vmatprep.subr.bf16.mxu1 %v2706_v37 }
  0x87   :  { %558 = vmatmul.mubr.f32.gmra.mrb[12].mxu1 %v88_v12  ;;  %306 = vmatprep.mubr.f32.mxu0 %v2705_v0  ;;  %v2910_v12 = vpack.c.bf16 %v891_v11, %v890_v10 }
  0x88   :  { %563 = vmatprep.mubr.f32.mxu1 %v2705_v0  ;;  %2228 = vmatpush1.bf16.msra.mxu0 %v2227_v13  ;;  %v106_v13 = vld [vmem:[#allocation2 + $0xc0] sm:$0xff] }
  0x89   :  { %2229 = vmatprep.subr.bf16.mxu0 %v2706_v37  ;;  %2358 = vmatpush1.bf16.msra.mxu1 %v2898_v3 }
  0x8a   :  { %307 = vmatmul.mubr.f32.gmra.mrb[14].mxu0 %v89_v19  ;;  %2343 = vmatprep.subr.bf16.mxu1 %v2706_v37 }
  0x8b   :  { %564 = vmatmul.mubr.f32.gmra.mrb[14].mxu1 %v89_v19  ;;  %312 = vmatprep.mubr.f32.mxu0 %v2705_v0  ;;  %v894_v19 = vld [vmem:[#allocation7 + $0x1a0] sm:$0xff] }
  0x8c   :  { %569 = vmatprep.mubr.f32.mxu1 %v2705_v0  ;;  %2231 = vmatpush1.bf16.msra.mxu0 %v2230_v20  ;;  %v895_v20 = vld [vmem:[#allocation7 + $0x1a8] sm:$0xff] }
  0x8d   :  { %2232 = vmatprep.subr.bf16.mxu0 %v2706_v37  ;;  %2359 = vmatpush1.bf16.msra.mxu1 %v2904_v7  ;;  %v2922_v21 = vpack.c.bf16 %v895_v20, %v894_v19 }
  0x8e   :  { %313 = vmatmul.mubr.f32.gmra.mrb[16].mxu0 %v90_v24  ;;  %2344 = vmatprep.subr.bf16.mxu1 %v2706_v37 }
  0x8f   :  { %570 = vmatmul.mubr.f32.gmra.mrb[16].mxu1 %v90_v24  ;;  %318 = vmatprep.mubr.f32.mxu0 %v2705_v0  ;;  %v896_v24 = vld [vmem:[#allocation7 + $0x1b0] sm:$0xff] }
  0x90   :  { %575 = vmatprep.mubr.f32.mxu1 %v2705_v0  ;;  %2234 = vmatpush1.bf16.msra.mxu0 %v2233_v25  ;;  %v897_v25 = vld [vmem:[#allocation7 + $0x1b8] sm:$0xff] }
  0x91   :  { %2235 = vmatprep.subr.bf16.mxu0 %v2706_v37  ;;  %2360 = vmatpush1.bf16.msra.mxu1 %v2910_v12  ;;  %v2928_v26 = vpack.c.bf16 %v897_v25, %v896_v24 }
  0x92   :  { %319 = vmatmul.mubr.f32.gmra.mrb[18].mxu0 %v91_v28  ;;  %2345 = vmatprep.subr.bf16.mxu1 %v2706_v37 }
  0x93   :  { %576 = vmatmul.mubr.f32.gmra.mrb[18].mxu1 %v91_v28  ;;  %324 = vmatprep.mubr.f32.mxu0 %v2705_v0  ;;  %v898_v28 = vld [vmem:[#allocation7 + $0x1c0] sm:$0xff] }
  0x94   :  { %581 = vmatprep.mubr.f32.mxu1 %v2705_v0  ;;  %2237 = vmatpush1.bf16.msra.mxu0 %v2236_v29  ;;  %v899_v29 = vld [vmem:[#allocation7 + $0x1c8] sm:$0xff] }
  0x95   :  { %2238 = vmatprep.subr.bf16.mxu0 %v2706_v37  ;;  %2361 = vmatpush1.bf16.msra.mxu1 %v2916_v17  ;;  %v2934_v30 = vpack.c.bf16 %v899_v29, %v898_v28 }
  0x96   :  { %325 = vmatmul.mubr.f32.gmra.mrb[20].mxu0 %v92_v32  ;;  %2346 = vmatprep.subr.bf16.mxu1 %v2706_v37 }
  0x97   :  { %582 = vmatmul.mubr.f32.gmra.mrb[20].mxu1 %v92_v32  ;;  %330 = vmatprep.mubr.f32.mxu0 %v2705_v0  ;;  %v900_v32 = vld [vmem:[#allocation7 + $0x1d0] sm:$0xff] }
  0x98   :  { %587 = vmatprep.mubr.f32.mxu1 %v2705_v0  ;;  %2240 = vmatpush1.bf16.msra.mxu0 %v2239_v33  ;;  %v901_v33 = vld [vmem:[#allocation7 + $0x1d8] sm:$0xff] }
  0x99   :  { %2241 = vmatprep.subr.bf16.mxu0 %v2706_v37  ;;  %2362 = vmatpush1.bf16.msra.mxu1 %v2922_v21  ;;  %v2940_v34 = vpack.c.bf16 %v901_v33, %v900_v32 }
  0x9a   :  { %331 = vmatmul.mubr.f32.gmra.mrb[22].mxu0 %v93_v36  ;;  %2347 = vmatprep.subr.bf16.mxu1 %v2706_v37 }
  0x9b   :  { %588 = vmatmul.mubr.f32.gmra.mrb[22].mxu1 %v93_v36  ;;  %336 = vmatprep.mubr.f32.mxu0 %v2705_v0  ;;  %v902_v36 = vld [vmem:[#allocation7 + $0x1e0] sm:$0xff] }
  0x9c   :  { %593 = vmatprep.mubr.f32.mxu1 %v2705_v0  ;;  %2243 = vmatpush1.bf16.msra.mxu0 %v2242_v38  ;;  %v903_v38 = vld [vmem:[#allocation7 + $0x1e8] sm:$0xff] }
  0x9d   :  { %2244 = vmatprep.subr.bf16.mxu0 %v2706_v37  ;;  %2363 = vmatpush1.bf16.msra.mxu1 %v2928_v26  ;;  %v2946_v39 = vpack.c.bf16 %v903_v38, %v902_v36 }
  0x9e   :  { %337 = vmatmul.mubr.f32.gmra.mrb[24].mxu0 %v94_v41  ;;  %2348 = vmatprep.subr.bf16.mxu1 %v2706_v37 }
  0x9f   :  { %594 = vmatmul.mubr.f32.gmra.mrb[24].mxu1 %v94_v41  ;;  %342 = vmatprep.mubr.f32.mxu0 %v2705_v0  ;;  %v904_v41 = vld [vmem:[#allocation7 + $0x1f0] sm:$0xff] }
  0xa0   :  { %599 = vmatprep.mubr.f32.mxu1 %v2705_v0  ;;  %2246 = vmatpush1.bf16.msra.mxu0 %v2245_v42  ;;  %v905_v42 = vld [vmem:[#allocation7 + $0x1f8] sm:$0xff] }
  0xa1   :  { %2247 = vmatprep.subr.bf16.mxu0 %v2706_v37  ;;  %2364 = vmatpush1.bf16.msra.mxu1 %v2934_v30  ;;  %v2952_v43 = vpack.c.bf16 %v905_v42, %v904_v41 }
  0xa2   :  { %343 = vmatmul.mubr.f32.gmra.mrb[26].mxu0 %v95_v45  ;;  %2349 = vmatprep.subr.bf16.mxu1 %v2706_v37 }
  0xa3   :  { %600 = vmatmul.mubr.f32.gmra.mrb[26].mxu1 %v95_v45  ;;  %348 = vmatprep.mubr.f32.mxu0 %v2705_v0  ;;  %v180_v45 = vlaneseq }
  0xa4   :  { %605 = vmatprep.mubr.f32.mxu1 %v2705_v0  ;;  %2249 = vmatpush1.bf16.msra.mxu0 %v2248_v46 }
  0xa5   :  { %2250 = vmatprep.subr.bf16.mxu0 %v2706_v37  ;;  %2365 = vmatpush1.bf16.msra.mxu1 %v2940_v34  ;;  %v2957_v46 = vshrl.u32 %v180_v45, 7 }
  0xa6   :  { %349 = vmatmul.mubr.f32.gmra.mrb[28].mxu0 %v96_v49  ;;  %2350 = vmatprep.subr.bf16.mxu1 %v2706_v37 }
  0xa7   :  { %606 = vmatmul.mubr.f32.gmra.mrb[28].mxu1 %v96_v49  ;;  %354 = vmatprep.mubr.f32.mxu0 %v2705_v0  ;;  %v182_v47 = vsub.s32 0, %v2957_v46  ;;  %v186_v49 = vsub.s32 1, %v2957_v46 }
  0xa8   :  { %611 = vmatprep.mubr.f32.mxu1 %v2705_v0  ;;  %2252 = vmatpush1.bf16.msra.mxu0 %v2251_v50 }
  0xa9   :  { %2253 = vmatprep.subr.bf16.mxu0 %v2706_v37  ;;  %2366 = vmatpush1.bf16.msra.mxu1 %v2946_v39  ;;  %v2967_v50 = vrot.slane %v2963_v48, %v182_v47 }
  0xaa   :  { %355 = vmatmul.mubr.f32.gmra.mrb[30].mxu0 %v97_v54  ;;  %2351 = vmatprep.subr.bf16.mxu1 %v2706_v37 }
  0xab   :  { %612 = vmatmul.mubr.f32.gmra.mrb[30].mxu1 %v97_v54  ;;  %360 = vmatprep.mubr.f32.mxu0 %v2705_v0 }
  0xac   :  { %617 = vmatprep.mubr.f32.mxu1 %v2705_v0  ;;  %2255 = vmatpush1.bf16.msra.mxu0 %v2254_v55 }
  0xad   :  { %2256 = vmatprep.subr.bf16.mxu0 %v2706_v37  ;;  %2367 = vmatpush1.bf16.msra.mxu1 %v2952_v43 }
  0xae   :  { %361 = vmatmul.mubr.f32.gmra.mrb[32].mxu0 %v98_v56 }
  0xaf   :  { %618 = vmatmul.mubr.f32.gmra.mrb[32].mxu1 %v98_v56  ;;  %366 = vmatprep.mubr.f32.mxu0 %v2705_v0 }
  0xb0   :  { %623 = vmatprep.mubr.f32.mxu1 %v2705_v0 }
  0xb2   :  { %367 = vmatmul.mubr.f32.gmra.mrb[34].mxu0 %v99_v57 }
  0xb3   :  { %624 = vmatmul.mubr.f32.gmra.mrb[34].mxu1 %v99_v57  ;;  %372 = vmatprep.mubr.f32.mxu0 %v2705_v0 }
  0xb4   :  { %629 = vmatprep.mubr.f32.mxu1 %v2705_v0 }
  0xb6   :  { %373 = vmatmul.mubr.f32.gmra.mrb[36].mxu0 %v100_v59 }
  0xb7   :  { %630 = vmatmul.mubr.f32.gmra.mrb[36].mxu1 %v100_v59  ;;  %378 = vmatprep.mubr.f32.mxu0 %v2705_v0 }
  0xb8   :  { %635 = vmatprep.mubr.f32.mxu1 %v2705_v0 }
  0xba   :  { %379 = vmatmul.mubr.f32.gmra.mrb[38].mxu0 %v101_v60 }
  0xbb   :  { %636 = vmatmul.mubr.f32.gmra.mrb[38].mxu1 %v101_v60  ;;  %384 = vmatprep.mubr.f32.mxu0 %v2705_v0 }
  0xbc   :  { %641 = vmatprep.mubr.f32.mxu1 %v2705_v0 }
  0xbe   :  { %385 = vmatmul.mubr.f32.gmra.mrb[40].mxu0 %v102_v61 }
  0xbf   :  { %642 = vmatmul.mubr.f32.gmra.mrb[40].mxu1 %v102_v61  ;;  %390 = vmatprep.mubr.f32.mxu0 %v2705_v0 }
  0xc0   :  { %647 = vmatprep.mubr.f32.mxu1 %v2705_v0 }
  0xc2   :  { %391 = vmatmul.mubr.f32.gmra.mrb[42].mxu0 %v103_v62 }
  0xc3   :  { %648 = vmatmul.mubr.f32.gmra.mrb[42].mxu1 %v103_v62  ;;  %396 = vmatprep.mubr.f32.mxu0 %v2705_v0 }
  0xc4   :  { %653 = vmatprep.mubr.f32.mxu1 %v2705_v0 }
  0xc6   :  { %397 = vmatmul.mubr.f32.gmra.mrb[44].mxu0 %v104_v4 }
  0xc7   :  { %654 = vmatmul.mubr.f32.gmra.mrb[44].mxu1 %v104_v4  ;;  %402 = vmatprep.mubr.f32.mxu0 %v2705_v0 }
  0xc8   :  { %659 = vmatprep.mubr.f32.mxu1 %v2705_v0 }
  0xca   :  { %403 = vmatmul.mubr.f32.gmra.mrb[46].mxu0 %v105_v8 }
  0xcb   :  { %660 = vmatmul.mubr.f32.gmra.mrb[46].mxu1 %v105_v8  ;;  %408 = vmatprep.mubr.f32.mxu0 %v2705_v0 }
  0xcc   :  { %665 = vmatprep.mubr.f32.mxu1 %v2705_v0 }
  0xce   :  { %409 = vmatmul.mubr.f32.gmra.mrb[48].mxu0 %v106_v13 }
  0xcf   :  { %666 = vmatmul.mubr.f32.gmra.mrb[48].mxu1 %v106_v13  ;;  %414 = vmatprep.mubr.f32.mxu0 %v2705_v0 }
  0xd0   :  { %671 = vmatprep.mubr.f32.mxu1 %v2705_v0 }
  0xd2   :  { %415 = vmatmul.mubr.f32.gmra.mrb[50].mxu0 %v107_v18 }
  0xd3   :  { %672 = vmatmul.mubr.f32.gmra.mrb[50].mxu1 %v107_v18  ;;  %420 = vmatprep.mubr.f32.mxu0 %v2705_v0 }
  0xd4   :  { %677 = vmatprep.mubr.f32.mxu1 %v2705_v0 }
  0xd6   :  { %421 = vmatmul.mubr.f32.gmra.mrb[52].mxu0 %v108_v22 }
  0xd7   :  { %678 = vmatmul.mubr.f32.gmra.mrb[52].mxu1 %v108_v22  ;;  %426 = vmatprep.mubr.f32.mxu0 %v2705_v0 }
  0xd8   :  { %683 = vmatprep.mubr.f32.mxu1 %v2705_v0 }
  0xda   :  { %427 = vmatmul.mubr.f32.gmra.mrb[54].mxu0 %v109_v27 }
  0xdb   :  { %684 = vmatmul.mubr.f32.gmra.mrb[54].mxu1 %v109_v27  ;;  %432 = vmatprep.mubr.f32.mxu0 %v2705_v0 }
  0xdc   :  { %689 = vmatprep.mubr.f32.mxu1 %v2705_v0 }
  0xde   :  { %433 = vmatmul.mubr.f32.gmra.mrb[56].mxu0 %v110_v31 }
  0xdf   :  { %690 = vmatmul.mubr.f32.gmra.mrb[56].mxu1 %v110_v31  ;;  %438 = vmatprep.mubr.f32.mxu0 %v2705_v0 }
  0xe0   :  { %695 = vmatprep.mubr.f32.mxu1 %v2705_v0 }
  0xe2   :  { %439 = vmatmul.mubr.f32.gmra.mrb[58].mxu0 %v111_v35 }
  0xe3   :  { %696 = vmatmul.mubr.f32.gmra.mrb[58].mxu1 %v111_v35  ;;  %444 = vmatprep.mubr.f32.mxu0 %v2705_v0 }
  0xe4   :  { %701 = vmatprep.mubr.f32.mxu1 %v2705_v0 }
  0xe6   :  { %445 = vmatmul.mubr.f32.gmra.mrb[60].mxu0 %v112_v40 }
  0xe7   :  { %702 = vmatmul.mubr.f32.gmra.mrb[60].mxu1 %v112_v40  ;;  %450 = vmatprep.mubr.f32.mxu0 %v2705_v0 }
  0xe8   :  { %707 = vmatprep.mubr.f32.mxu1 %v2705_v0  ;;  %v2970_v0 = vrot.slane %v2963_v48, %v186_v49 }
  0xea   :  { %451 = vmatmul.mubr.f32.gmra.mrb[62].mxu0 %v113_v44 }
  0xeb   :  { %708 = vmatmul.mubr.f32.gmra.mrb[62].mxu1 %v113_v44 }
 0x141   :  { %v266_v52 = vpop.f32.mrb[0].mxu0 }
 0x142   :  { %v267_v53 = vadd.f32 %v266_v52, %v2967_v50  ;;  %v268_v54 = vpop.f32.mrb[1].mxu0  ;;  %v2973_v55 = vpop.f32.mrb[0].mxu1 }
 0x143   :  { %v269_v56 = vadd.f32 %v268_v54, %v2970_v0  ;;  %v2976_v57 = vpop.f32.mrb[1].mxu1 }
 0x144   :  { %v714_v61 = vmax.f32 %v267_v53, 0.0 }
 0x145   :  { %v715_v59 = vmax.f32 %v269_v56, 0.0  ;;  %v272_v60 = vpop.f32.mrb[2].mxu0 }
 0x146   :  { %v273_v62 = vadd.f32 %v272_v60, %v2967_v50  ;;  %v274_v63 = vpop.f32.mrb[3].mxu0  ;;  %v2979_v1 = vpop.f32.mrb[2].mxu1  ;;  %v190_v60 = vsub.s32 2, %v2957_v46 }
 0x147   :  { %v275_v4 = vadd.f32 %v274_v63, %v2970_v0  ;;  %977 = vmatprep.mubr.f32.mxu0 %v715_v59  ;;  %v2982_v5 = vpop.f32.mrb[3].mxu1  ;;  %v194_v63 = vsub.s32 3, %v2957_v46 }
 0x148   :  { %978 = vmatmul.mubr.f32.vlgmr.msra.gmra.mrb[64].mxu0 %v714_v61  ;;  %v718_v10 = vmax.f32 %v273_v62, 0.0 }
 0x149   :  { %v719_v6 = vmax.f32 %v275_v4, 0.0  ;;  %2258 = vmatpush1.bf16.msra.mxu0 %v2822_v51  ;;  %v278_v8 = vpop.f32.mrb[4].mxu0 }
 0x14a   :  { %v279_v11 = vadd.f32 %v278_v8, %v2967_v50  ;;  %v280_v13 = vpop.f32.mrb[5].mxu0  ;;  %2259 = vmatprep.subr.bf16.mxu0 %v2706_v37  ;;  %v2987_v14 = vpop.f32.mrb[4].mxu1 }
 0x14b   :  { %v281_v15 = vadd.f32 %v280_v13, %v2970_v0  ;;  %982 = vmatprep.mubr.f32.mxu0 %v719_v6  ;;  %v2990_v18 = vpop.f32.mrb[5].mxu1  ;;  %v3032_v13 = vrot.slane %v2963_v48, %v190_v60 }
 0x14c   :  { %983 = vmatmul.mubr.f32.gmra.mrb[66].mxu0 %v718_v10  ;;  %v722_v51 = vmax.f32 %v279_v11, 0.0 }
 0x14d   :  { %v723_v19 = vmax.f32 %v281_v15, 0.0  ;;  %v284_v20 = vpop.f32.mrb[6].mxu0  ;;  %2261 = vmatpush1.bf16.msra.mxu0 %v2828_v58 }
 0x14e   :  { %v285_v22 = vadd.f32 %v284_v20, %v2967_v50  ;;  %v286_v24 = vpop.f32.mrb[7].mxu0  ;;  %2262 = vmatprep.subr.bf16.mxu0 %v2706_v37  ;;  %v2995_v25 = vpop.f32.mrb[6].mxu1 }
 0x14f   :  { %v287_v27 = vadd.f32 %v286_v24, %v2970_v0  ;;  %987 = vmatprep.mubr.f32.mxu0 %v723_v19  ;;  %v2998_v28 = vpop.f32.mrb[7].mxu1  ;;  %v3038_v19 = vrot.slane %v2963_v48, %v194_v63 }
 0x150   :  { %988 = vmatmul.mubr.f32.gmra.mrb[68].mxu0 %v722_v51  ;;  %v726_v32 = vmax.f32 %v285_v22, 0.0 }
 0x151   :  { %v727_v29 = vmax.f32 %v287_v27, 0.0  ;;  %v290_v31 = vpop.f32.mrb[8].mxu0  ;;  %2264 = vmatpush1.bf16.msra.mxu0 %v2835_v2 }
 0x152   :  { %v291_v58 = vadd.f32 %v290_v31, %v2967_v50  ;;  %v292_v33 = vpop.f32.mrb[9].mxu0  ;;  %v3002_v35 = vpop.f32.mrb[8].mxu1  ;;  %2265 = vmatprep.subr.bf16.mxu0 %v2706_v37 }
 0x153   :  { %v293_v36 = vadd.f32 %v292_v33, %v2970_v0  ;;  %992 = vmatprep.mubr.f32.mxu0 %v727_v29  ;;  %v3006_v38 = vpop.f32.mrb[9].mxu1 }
 0x154   :  { %993 = vmatmul.mubr.f32.gmra.mrb[70].mxu0 %v726_v32  ;;  %v730_v42 = vmax.f32 %v291_v58, 0.0 }
 0x155   :  { %v731_v40 = vmax.f32 %v293_v36, 0.0  ;;  %v296_v41 = vpop.f32.mrb[10].mxu0  ;;  %2267 = vmatpush1.bf16.msra.mxu0 %v2842_v9 }
 0x156   :  { %v297_v2 = vadd.f32 %v296_v41, %v2967_v50  ;;  %v298_v44 = vpop.f32.mrb[11].mxu0  ;;  %v3010_v45 = vpop.f32.mrb[10].mxu1  ;;  %2268 = vmatprep.subr.bf16.mxu0 %v2706_v37 }
 0x157   :  { %v299_v47 = vadd.f32 %v298_v44, %v2970_v0  ;;  %997 = vmatprep.mubr.f32.mxu0 %v731_v40  ;;  %v3014_v49 = vpop.f32.mrb[11].mxu1 }
 0x158   :  { %998 = vmatmul.mubr.f32.gmra.mrb[72].mxu0 %v730_v42  ;;  %v734_v54 = vmax.f32 %v297_v2, 0.0 }
 0x159   :  { %v735_v52 = vmax.f32 %v299_v47, 0.0  ;;  %v302_v53 = vpop.f32.mrb[12].mxu0  ;;  %2270 = vmatpush1.bf16.msra.mxu0 %v2849_v16 }
 0x15a   :  { %v303_v9 = vadd.f32 %v302_v53, %v2967_v50  ;;  %v304_v56 = vpop.f32.mrb[13].mxu0  ;;  %v3018_v59 = vpop.f32.mrb[12].mxu1  ;;  %2271 = vmatprep.subr.bf16.mxu0 %v2706_v37 }
 0x15b   :  { %v305_v61 = vadd.f32 %v304_v56, %v2970_v0  ;;  %1002 = vmatprep.mubr.f32.mxu0 %v735_v52  ;;  %v3023_v62 = vpop.f32.mrb[13].mxu1 }
 0x15c   :  { %1003 = vmatmul.mubr.f32.gmra.mrb[74].mxu0 %v734_v54  ;;  %v738_v6 = vmax.f32 %v303_v9, 0.0 }
 0x15d   :  { %v739_v4 = vmax.f32 %v305_v61, 0.0  ;;  %v308_v16 = vpop.f32.mrb[14].mxu0  ;;  %2273 = vmatpush1.bf16.msra.mxu0 %v2856_v23 }
 0x15e   :  { %v309_v8 = vadd.f32 %v308_v16, %v2967_v50  ;;  %v310_v10 = vpop.f32.mrb[15].mxu0  ;;  %v3028_v11 = vpop.f32.mrb[14].mxu1  ;;  %2274 = vmatprep.subr.bf16.mxu0 %v2706_v37 }
 0x15f   :  { %v311_v15 = vadd.f32 %v310_v10, %v2970_v0  ;;  %1007 = vmatprep.mubr.f32.mxu0 %v739_v4  ;;  %v3035_v46 = vpop.f32.mrb[15].mxu1 }
 0x160   :  { %1008 = vmatmul.mubr.f32.gmra.mrb[76].mxu0 %v738_v6  ;;  %v742_v51 = vmax.f32 %v309_v8, 0.0 }
 0x161   :  { %v743_v23 = vmax.f32 %v311_v15, 0.0  ;;  %v314_v20 = vpop.f32.mrb[16].mxu0  ;;  %2276 = vmatpush1.bf16.msra.mxu0 %v2898_v3 }
 0x162   :  { %v315_v22 = vadd.f32 %v314_v20, %v2967_v50  ;;  %v316_v24 = vpop.f32.mrb[17].mxu0  ;;  %v571_v27 = vpop.f32.mrb[16].mxu1  ;;  %2277 = vmatprep.subr.bf16.mxu0 %v2706_v37 }
 0x163   :  { %v317_v29 = vadd.f32 %v316_v24, %v2970_v0  ;;  %v572_v31 = vadd.f32 %v571_v27, %v3032_v13  ;;  %1012 = vmatprep.mubr.f32.mxu0 %v743_v23  ;;  %v573_v32 = vpop.f32.mrb[17].mxu1 }
 0x164   :  { %v574_v48 = vadd.f32 %v573_v32, %v3038_v19  ;;  %1013 = vmatmul.mubr.f32.gmra.mrb[78].mxu0 %v742_v51  ;;  %v746_v3 = vmax.f32 %v315_v22, 0.0 }
 0x165   :  { %v747_v58 = vmax.f32 %v317_v29, 0.0  ;;  %v748_v33 = vmax.f32 %v572_v31, 0.0  ;;  %v320_v36 = vpop.f32.mrb[18].mxu0  ;;  %2279 = vmatpush1.bf16.msra.mxu0 %v2904_v7 }
 0x166   :  { %v749_v40 = vmax.f32 %v574_v48, 0.0  ;;  %v321_v41 = vadd.f32 %v320_v36, %v2967_v50  ;;  %v322_v42 = vpop.f32.mrb[19].mxu0  ;;  %v577_v2 = vpop.f32.mrb[18].mxu1  ;;  %2280 = vmatprep.subr.bf16.mxu0 %v2706_v37 }
 0x167   :  { %v323_v44 = vadd.f32 %v322_v42, %v2970_v0  ;;  %v578_v47 = vadd.f32 %v577_v2, %v3032_v13  ;;  %1017 = vmatprep.mubr.f32.mxu0 %v747_v58  ;;  %v579_v52 = vpop.f32.mrb[19].mxu1 }
 0x168   :  { %v580_v53 = vadd.f32 %v579_v52, %v3038_v19  ;;  %1018 = vmatmul.mubr.f32.gmra.mrb[80].mxu0 %v746_v3  ;;  %1242 = vmatprep.mubr.f32.mxu1 %v749_v40  ;;  %v750_v56 = vmax.f32 %v321_v41, 0.0 }
 0x169   :  { %v751_v54 = vmax.f32 %v323_v44, 0.0  ;;  %v752_v7 = vmax.f32 %v578_v47, 0.0  ;;  %v326_v9 = vpop.f32.mrb[20].mxu0  ;;  %1243 = vmatmul.mubr.f32.vlgmr.msra.gmra.mrb[64].mxu1 %v748_v33  ;;  %2282 = vmatpush1.bf16.msra.mxu0 %v2910_v12 }
 0x16a   :  { %v753_v60 = vmax.f32 %v580_v53, 0.0  ;;  %v327_v61 = vadd.f32 %v326_v9, %v2967_v50  ;;  %v328_v63 = vpop.f32.mrb[21].mxu0  ;;  %v583_v4 = vpop.f32.mrb[20].mxu1  ;;  %2283 = vmatprep.subr.bf16.mxu0 %v2706_v37 }
 0x16b   :  { %v329_v16 = vadd.f32 %v328_v63, %v2970_v0  ;;  %v584_v6 = vadd.f32 %v583_v4, %v3032_v13  ;;  %1022 = vmatprep.mubr.f32.mxu0 %v751_v54  ;;  %v585_v8 = vpop.f32.mrb[21].mxu1 }
 0x16c   :  { %v586_v10 = vadd.f32 %v585_v8, %v3038_v19  ;;  %1023 = vmatmul.mubr.f32.gmra.mrb[82].mxu0 %v750_v56  ;;  %1247 = vmatprep.mubr.f32.mxu1 %v753_v60  ;;  %v754_v20 = vmax.f32 %v327_v61, 0.0 }
 0x16d   :  { %v755_v15 = vmax.f32 %v329_v16, 0.0  ;;  %v756_v12 = vmax.f32 %v584_v6, 0.0  ;;  %v332_v23 = vpop.f32.mrb[22].mxu0  ;;  %1248 = vmatmul.mubr.f32.gmra.mrb[66].mxu1 %v752_v7  ;;  %2285 = vmatpush1.bf16.msra.mxu0 %v2916_v17 }
 0x16e   :  { %v757_v51 = vmax.f32 %v586_v10, 0.0  ;;  %v333_v22 = vadd.f32 %v332_v23, %v2967_v50  ;;  %v334_v24 = vpop.f32.mrb[23].mxu0  ;;  %v589_v27 = vpop.f32.mrb[22].mxu1  ;;  %2286 = vmatprep.subr.bf16.mxu0 %v2706_v37 }
 0x16f   :  { %v335_v29 = vadd.f32 %v334_v24, %v2970_v0  ;;  %v590_v31 = vadd.f32 %v589_v27, %v3032_v13  ;;  %1027 = vmatprep.mubr.f32.mxu0 %v755_v15  ;;  %v591_v32 = vpop.f32.mrb[23].mxu1 }
 0x170   :  { %v592_v48 = vadd.f32 %v591_v32, %v3038_v19  ;;  %1028 = vmatmul.mubr.f32.gmra.mrb[84].mxu0 %v754_v20  ;;  %1252 = vmatprep.mubr.f32.mxu1 %v757_v51  ;;  %v758_v36 = vmax.f32 %v333_v22, 0.0 }
 0x171   :  { %v759_v58 = vmax.f32 %v335_v29, 0.0  ;;  %v760_v17 = vmax.f32 %v590_v31, 0.0  ;;  %v338_v33 = vpop.f32.mrb[24].mxu0  ;;  %1253 = vmatmul.mubr.f32.gmra.mrb[68].mxu1 %v756_v12  ;;  %2288 = vmatpush1.bf16.msra.mxu0 %v2922_v21 }
 0x172   :  { %v761_v3 = vmax.f32 %v592_v48, 0.0  ;;  %v339_v40 = vadd.f32 %v338_v33, %v2967_v50  ;;  %v340_v41 = vpop.f32.mrb[25].mxu0  ;;  %v595_v42 = vpop.f32.mrb[24].mxu1  ;;  %2289 = vmatprep.subr.bf16.mxu0 %v2706_v37 }
 0x173   :  { %v341_v2 = vadd.f32 %v340_v41, %v2970_v0  ;;  %v596_v44 = vadd.f32 %v595_v42, %v3032_v13  ;;  %1032 = vmatprep.mubr.f32.mxu0 %v759_v58  ;;  %v597_v47 = vpop.f32.mrb[25].mxu1 }
 0x174   :  { %v598_v52 = vadd.f32 %v597_v47, %v3038_v19  ;;  %1033 = vmatmul.mubr.f32.gmra.mrb[86].mxu0 %v758_v36  ;;  %1257 = vmatprep.mubr.f32.mxu1 %v761_v3  ;;  %v762_v7 = vmax.f32 %v339_v40, 0.0 }
 0x175   :  { %v763_v53 = vmax.f32 %v341_v2, 0.0  ;;  %v764_v21 = vmax.f32 %v596_v44, 0.0  ;;  %v344_v54 = vpop.f32.mrb[26].mxu0  ;;  %1258 = vmatmul.mubr.f32.gmra.mrb[70].mxu1 %v760_v17  ;;  %2291 = vmatpush1.bf16.msra.mxu0 %v2928_v26 }
 0x176   :  { %v765_v9 = vmax.f32 %v598_v52, 0.0  ;;  %v345_v56 = vadd.f32 %v344_v54, %v2967_v50  ;;  %v346_v60 = vpop.f32.mrb[27].mxu0  ;;  %v601_v61 = vpop.f32.mrb[26].mxu1  ;;  %2292 = vmatprep.subr.bf16.mxu0 %v2706_v37 }
 0x177   :  { %v347_v63 = vadd.f32 %v346_v60, %v2970_v0  ;;  %v602_v4 = vadd.f32 %v601_v61, %v3032_v13  ;;  %1037 = vmatprep.mubr.f32.mxu0 %v763_v53  ;;  %v603_v16 = vpop.f32.mrb[27].mxu1 }
 0x178   :  { %v604_v6 = vadd.f32 %v603_v16, %v3038_v19  ;;  %1038 = vmatmul.mubr.f32.gmra.mrb[88].mxu0 %v762_v7  ;;  %1262 = vmatprep.mubr.f32.mxu1 %v765_v9  ;;  %v766_v15 = vmax.f32 %v345_v56, 0.0 }
 0x179   :  { %v767_v8 = vmax.f32 %v347_v63, 0.0  ;;  %v768_v26 = vmax.f32 %v602_v4, 0.0  ;;  %v350_v10 = vpop.f32.mrb[28].mxu0  ;;  %1263 = vmatmul.mubr.f32.gmra.mrb[72].mxu1 %v764_v21  ;;  %2294 = vmatpush1.bf16.msra.mxu0 %v2934_v30 }
 0x17a   :  { %v769_v12 = vmax.f32 %v604_v6, 0.0  ;;  %v351_v23 = vadd.f32 %v350_v10, %v2967_v50  ;;  %v352_v20 = vpop.f32.mrb[29].mxu0  ;;  %v607_v51 = vpop.f32.mrb[28].mxu1  ;;  %2295 = vmatprep.subr.bf16.mxu0 %v2706_v37 }
 0x17b   :  { %v353_v22 = vadd.f32 %v352_v20, %v2970_v0  ;;  %v608_v24 = vadd.f32 %v607_v51, %v3032_v13  ;;  %1042 = vmatprep.mubr.f32.mxu0 %v767_v8  ;;  %v609_v27 = vpop.f32.mrb[29].mxu1 }
 0x17c   :  { %v610_v29 = vadd.f32 %v609_v27, %v3038_v19  ;;  %1043 = vmatmul.mubr.f32.gmra.mrb[90].mxu0 %v766_v15  ;;  %1267 = vmatprep.mubr.f32.mxu1 %v769_v12  ;;  %v770_v48 = vmax.f32 %v351_v23, 0.0 }
 0x17d   :  { %v771_v31 = vmax.f32 %v353_v22, 0.0  ;;  %v772_v30 = vmax.f32 %v608_v24, 0.0  ;;  %v356_v32 = vpop.f32.mrb[30].mxu0  ;;  %1268 = vmatmul.mubr.f32.gmra.mrb[74].mxu1 %v768_v26  ;;  %2297 = vmatpush1.bf16.msra.mxu0 %v2940_v34 }
 0x17e   :  { %v773_v58 = vmax.f32 %v610_v29, 0.0  ;;  %v357_v17 = vadd.f32 %v356_v32, %v2967_v50  ;;  %v358_v33 = vpop.f32.mrb[31].mxu0  ;;  %v613_v36 = vpop.f32.mrb[30].mxu1  ;;  %2298 = vmatprep.subr.bf16.mxu0 %v2706_v37 }
 0x17f   :  { %v359_v3 = vadd.f32 %v358_v33, %v2970_v0  ;;  %v614_v40 = vadd.f32 %v613_v36, %v3032_v13  ;;  %1047 = vmatprep.mubr.f32.mxu0 %v771_v31  ;;  %v615_v41 = vpop.f32.mrb[31].mxu1 }
 0x180   :  { %v616_v42 = vadd.f32 %v615_v41, %v3038_v19  ;;  %1048 = vmatmul.mubr.f32.gmra.mrb[92].mxu0 %v770_v48  ;;  %1272 = vmatprep.mubr.f32.mxu1 %v773_v58  ;;  %v774_v47 = vmax.f32 %v357_v17, 0.0 }
 0x181   :  { %v775_v2 = vmax.f32 %v359_v3, 0.0  ;;  %v776_v34 = vmax.f32 %v614_v40, 0.0  ;;  %v362_v44 = vpop.f32.mrb[32].mxu0  ;;  %1273 = vmatmul.mubr.f32.gmra.mrb[76].mxu1 %v772_v30  ;;  %2300 = vmatpush1.bf16.msra.mxu0 %v2946_v39 }
 0x182   :  { %v777_v52 = vmax.f32 %v616_v42, 0.0  ;;  %v363_v53 = vadd.f32 %v362_v44, %v2967_v50  ;;  %v364_v21 = vpop.f32.mrb[33].mxu0  ;;  %v619_v54 = vpop.f32.mrb[32].mxu1  ;;  %2301 = vmatprep.subr.bf16.mxu0 %v2706_v37 }
 0x183   :  { %v365_v7 = vadd.f32 %v364_v21, %v2970_v0  ;;  %v620_v9 = vadd.f32 %v619_v54, %v3032_v13  ;;  %1052 = vmatprep.mubr.f32.mxu0 %v775_v2  ;;  %v621_v56 = vpop.f32.mrb[33].mxu1 }
 0x184   :  { %v622_v60 = vadd.f32 %v621_v56, %v3038_v19  ;;  %1053 = vmatmul.mubr.f32.gmra.mrb[94].mxu0 %v774_v47  ;;  %1277 = vmatprep.mubr.f32.mxu1 %v777_v52  ;;  %v778_v4 = vmax.f32 %v363_v53, 0.0 }
 0x185   :  { %v779_v61 = vmax.f32 %v365_v7, 0.0  ;;  %v780_v39 = vmax.f32 %v620_v9, 0.0  ;;  %v368_v63 = vpop.f32.mrb[34].mxu0  ;;  %1278 = vmatmul.mubr.f32.gmra.mrb[78].mxu1 %v776_v34  ;;  %2303 = vmatpush1.bf16.msra.mxu0 %v2952_v43 }
 0x186   :  { %v781_v16 = vmax.f32 %v622_v60, 0.0  ;;  %v369_v37 = vadd.f32 %v368_v63, %v2967_v50  ;;  %v370_v6 = vpop.f32.mrb[35].mxu0  ;;  %v625_v8 = vpop.f32.mrb[34].mxu1 }
 0x187   :  { %v371_v26 = vadd.f32 %v370_v6, %v2970_v0  ;;  %v626_v10 = vadd.f32 %v625_v8, %v3032_v13  ;;  %1057 = vmatprep.mubr.f32.mxu0 %v779_v61  ;;  %v627_v15 = vpop.f32.mrb[35].mxu1 }
 0x188   :  { %v628_v12 = vadd.f32 %v627_v15, %v3038_v19  ;;  %1058 = vmatmul.mubr.f32.gmra.mrb[96].mxu0 %v778_v4  ;;  %1282 = vmatprep.mubr.f32.mxu1 %v781_v16  ;;  %v782_v43 = vmax.f32 %v369_v37, 0.0 }
 0x189   :  { %v783_v23 = vmax.f32 %v371_v26, 0.0  ;;  %v784_v20 = vmax.f32 %v626_v10, 0.0  ;;  %v374_v51 = vpop.f32.mrb[36].mxu0  ;;  %1283 = vmatmul.mubr.f32.gmra.mrb[80].mxu1 %v780_v39 }
 0x18a   :  { %v785_v22 = vmax.f32 %v628_v12, 0.0  ;;  %v375_v24 = vadd.f32 %v374_v51, %v2967_v50  ;;  %v376_v27 = vpop.f32.mrb[37].mxu0  ;;  %v631_v29 = vpop.f32.mrb[36].mxu1 }
 0x18b   :  { %v377_v31 = vadd.f32 %v376_v27, %v2970_v0  ;;  %v632_v30 = vadd.f32 %v631_v29, %v3032_v13  ;;  %1062 = vmatprep.mubr.f32.mxu0 %v783_v23  ;;  %v633_v32 = vpop.f32.mrb[37].mxu1 }
 0x18c   :  { %v634_v48 = vadd.f32 %v633_v32, %v3038_v19  ;;  %1063 = vmatmul.mubr.f32.gmra.mrb[98].mxu0 %v782_v43  ;;  %1287 = vmatprep.mubr.f32.mxu1 %v785_v22  ;;  %v786_v36 = vmax.f32 %v375_v24, 0.0 }
 0x18d   :  { %v787_v58 = vmax.f32 %v377_v31, 0.0  ;;  %v788_v17 = vmax.f32 %v632_v30, 0.0  ;;  %v380_v33 = vpop.f32.mrb[38].mxu0  ;;  %1288 = vmatmul.mubr.f32.gmra.mrb[82].mxu1 %v784_v20 }
 0x18e   :  { %v789_v3 = vmax.f32 %v634_v48, 0.0  ;;  %v381_v40 = vadd.f32 %v380_v33, %v2967_v50  ;;  %v382_v41 = vpop.f32.mrb[39].mxu0  ;;  %v637_v42 = vpop.f32.mrb[38].mxu1 }
 0x18f   :  { %v383_v2 = vadd.f32 %v382_v41, %v2970_v0  ;;  %v638_v34 = vadd.f32 %v637_v42, %v3032_v13  ;;  %1067 = vmatprep.mubr.f32.mxu0 %v787_v58  ;;  %v639_v44 = vpop.f32.mrb[39].mxu1 }
 0x190   :  { %v640_v47 = vadd.f32 %v639_v44, %v3038_v19  ;;  %1068 = vmatmul.mubr.f32.gmra.mrb[100].mxu0 %v786_v36  ;;  %1292 = vmatprep.mubr.f32.mxu1 %v789_v3  ;;  %v790_v54 = vmax.f32 %v381_v40, 0.0 }
 0x191   :  { %v791_v52 = vmax.f32 %v383_v2, 0.0  ;;  %v792_v53 = vmax.f32 %v638_v34, 0.0  ;;  %v386_v21 = vpop.f32.mrb[40].mxu0  ;;  %1293 = vmatmul.mubr.f32.gmra.mrb[84].mxu1 %v788_v17 }
 0x192   :  { %v793_v7 = vmax.f32 %v640_v47, 0.0  ;;  %v387_v9 = vadd.f32 %v386_v21, %v2967_v50  ;;  %v388_v56 = vpop.f32.mrb[41].mxu0  ;;  %v643_v60 = vpop.f32.mrb[40].mxu1 }
 0x193   :  { %v389_v61 = vadd.f32 %v388_v56, %v2970_v0  ;;  %v644_v39 = vadd.f32 %v643_v60, %v3032_v13  ;;  %1072 = vmatprep.mubr.f32.mxu0 %v791_v52  ;;  %v645_v63 = vpop.f32.mrb[41].mxu1 }
 0x194   :  { %v646_v4 = vadd.f32 %v645_v63, %v3038_v19  ;;  %1073 = vmatmul.mubr.f32.gmra.mrb[102].mxu0 %v790_v54  ;;  %1297 = vmatprep.mubr.f32.mxu1 %v793_v7  ;;  %v794_v8 = vmax.f32 %v387_v9, 0.0 }
 0x195   :  { %v795_v16 = vmax.f32 %v389_v61, 0.0  ;;  %v796_v37 = vmax.f32 %v644_v39, 0.0  ;;  %v392_v6 = vpop.f32.mrb[42].mxu0  ;;  %1298 = vmatmul.mubr.f32.gmra.mrb[86].mxu1 %v792_v53 }
 0x196   :  { %v797_v26 = vmax.f32 %v646_v4, 0.0  ;;  %v393_v10 = vadd.f32 %v392_v6, %v2967_v50  ;;  %v394_v15 = vpop.f32.mrb[43].mxu0  ;;  %v649_v12 = vpop.f32.mrb[42].mxu1 }
 0x197   :  { %v395_v23 = vadd.f32 %v394_v15, %v2970_v0  ;;  %v650_v20 = vadd.f32 %v649_v12, %v3032_v13  ;;  %1077 = vmatprep.mubr.f32.mxu0 %v795_v16  ;;  %v651_v51 = vpop.f32.mrb[43].mxu1 }
 0x198   :  { %v652_v43 = vadd.f32 %v651_v51, %v3038_v19  ;;  %1078 = vmatmul.mubr.f32.gmra.mrb[104].mxu0 %v794_v8  ;;  %1302 = vmatprep.mubr.f32.mxu1 %v797_v26  ;;  %v798_v29 = vmax.f32 %v393_v10, 0.0 }
 0x199   :  { %v799_v22 = vmax.f32 %v395_v23, 0.0  ;;  %v800_v24 = vmax.f32 %v650_v20, 0.0  ;;  %v398_v27 = vpop.f32.mrb[44].mxu0  ;;  %1303 = vmatmul.mubr.f32.gmra.mrb[88].mxu1 %v796_v37 }
 0x19a   :  { %v801_v31 = vmax.f32 %v652_v43, 0.0  ;;  %v399_v30 = vadd.f32 %v398_v27, %v2967_v50  ;;  %v400_v32 = vpop.f32.mrb[45].mxu0  ;;  %v655_v48 = vpop.f32.mrb[44].mxu1 }
 0x19b   :  { %v401_v58 = vadd.f32 %v400_v32, %v2970_v0  ;;  %v656_v17 = vadd.f32 %v655_v48, %v3032_v13  ;;  %1082 = vmatprep.mubr.f32.mxu0 %v799_v22  ;;  %v657_v33 = vpop.f32.mrb[45].mxu1 }
 0x19c   :  { %v658_v36 = vadd.f32 %v657_v33, %v3038_v19  ;;  %1083 = vmatmul.mubr.f32.gmra.mrb[106].mxu0 %v798_v29  ;;  %1307 = vmatprep.mubr.f32.mxu1 %v801_v31  ;;  %v802_v42 = vmax.f32 %v399_v30, 0.0 }
 0x19d   :  { %v803_v3 = vmax.f32 %v401_v58, 0.0  ;;  %v804_v40 = vmax.f32 %v656_v17, 0.0  ;;  %v404_v41 = vpop.f32.mrb[46].mxu0  ;;  %1308 = vmatmul.mubr.f32.gmra.mrb[90].mxu1 %v800_v24 }
 0x19e   :  { %v805_v2 = vmax.f32 %v658_v36, 0.0  ;;  %v405_v34 = vadd.f32 %v404_v41, %v2967_v50  ;;  %v406_v44 = vpop.f32.mrb[47].mxu0  ;;  %v661_v47 = vpop.f32.mrb[46].mxu1 }
 0x19f   :  { %v407_v52 = vadd.f32 %v406_v44, %v2970_v0  ;;  %v662_v53 = vadd.f32 %v661_v47, %v3032_v13  ;;  %1087 = vmatprep.mubr.f32.mxu0 %v803_v3  ;;  %v663_v21 = vpop.f32.mrb[47].mxu1 }
 0x1a0   :  { %v664_v54 = vadd.f32 %v663_v21, %v3038_v19  ;;  %1088 = vmatmul.mubr.f32.gmra.mrb[108].mxu0 %v802_v42  ;;  %1312 = vmatprep.mubr.f32.mxu1 %v805_v2  ;;  %v806_v60 = vmax.f32 %v405_v34, 0.0 }
 0x1a1   :  { %v807_v7 = vmax.f32 %v407_v52, 0.0  ;;  %v808_v9 = vmax.f32 %v662_v53, 0.0  ;;  %v410_v56 = vpop.f32.mrb[48].mxu0  ;;  %1313 = vmatmul.mubr.f32.gmra.mrb[92].mxu1 %v804_v40 }
 0x1a2   :  { %v809_v61 = vmax.f32 %v664_v54, 0.0  ;;  %v411_v39 = vadd.f32 %v410_v56, %v2967_v50  ;;  %v412_v63 = vpop.f32.mrb[49].mxu0  ;;  %v667_v4 = vpop.f32.mrb[48].mxu1 }
 0x1a3   :  { %v413_v16 = vadd.f32 %v412_v63, %v2970_v0  ;;  %v668_v37 = vadd.f32 %v667_v4, %v3032_v13  ;;  %1092 = vmatprep.mubr.f32.mxu0 %v807_v7  ;;  %v669_v6 = vpop.f32.mrb[49].mxu1 }
 0x1a4   :  { %v670_v8 = vadd.f32 %v669_v6, %v3038_v19  ;;  %1093 = vmatmul.mubr.f32.gmra.mrb[110].mxu0 %v806_v60  ;;  %1317 = vmatprep.mubr.f32.mxu1 %v809_v61  ;;  %v810_v12 = vmax.f32 %v411_v39, 0.0 }
 0x1a5   :  { %v811_v26 = vmax.f32 %v413_v16, 0.0  ;;  %v812_v10 = vmax.f32 %v668_v37, 0.0  ;;  %v416_v15 = vpop.f32.mrb[50].mxu0  ;;  %1318 = vmatmul.mubr.f32.gmra.mrb[94].mxu1 %v808_v9 }
 0x1a6   :  { %v813_v23 = vmax.f32 %v670_v8, 0.0  ;;  %v417_v20 = vadd.f32 %v416_v15, %v2967_v50  ;;  %v418_v51 = vpop.f32.mrb[51].mxu0  ;;  %v673_v43 = vpop.f32.mrb[50].mxu1 }
 0x1a7   :  { %v419_v22 = vadd.f32 %v418_v51, %v2970_v0  ;;  %v674_v24 = vadd.f32 %v673_v43, %v3032_v13  ;;  %1097 = vmatprep.mubr.f32.mxu0 %v811_v26  ;;  %v675_v27 = vpop.f32.mrb[51].mxu1 }
 0x1a8   :  { %v676_v29 = vadd.f32 %v675_v27, %v3038_v19  ;;  %1098 = vmatmul.mubr.f32.gmra.mrb[112].mxu0 %v810_v12  ;;  %1322 = vmatprep.mubr.f32.mxu1 %v813_v23  ;;  %v814_v48 = vmax.f32 %v417_v20, 0.0 }
 0x1a9   :  { %v815_v31 = vmax.f32 %v419_v22, 0.0  ;;  %v816_v30 = vmax.f32 %v674_v24, 0.0  ;;  %v422_v32 = vpop.f32.mrb[52].mxu0  ;;  %1323 = vmatmul.mubr.f32.gmra.mrb[96].mxu1 %v812_v10 }
 0x1aa   :  { %v817_v58 = vmax.f32 %v676_v29, 0.0  ;;  %v423_v17 = vadd.f32 %v422_v32, %v2967_v50  ;;  %v424_v33 = vpop.f32.mrb[53].mxu0  ;;  %v679_v36 = vpop.f32.mrb[52].mxu1 }
 0x1ab   :  { %v425_v3 = vadd.f32 %v424_v33, %v2970_v0  ;;  %v680_v40 = vadd.f32 %v679_v36, %v3032_v13  ;;  %1102 = vmatprep.mubr.f32.mxu0 %v815_v31  ;;  %v681_v41 = vpop.f32.mrb[53].mxu1 }
 0x1ac   :  { %v682_v42 = vadd.f32 %v681_v41, %v3038_v19  ;;  %1103 = vmatmul.mubr.f32.gmra.mrb[114].mxu0 %v814_v48  ;;  %1327 = vmatprep.mubr.f32.mxu1 %v817_v58  ;;  %v818_v47 = vmax.f32 %v423_v17, 0.0 }
 0x1ad   :  { %v819_v2 = vmax.f32 %v425_v3, 0.0  ;;  %v820_v34 = vmax.f32 %v680_v40, 0.0  ;;  %v428_v44 = vpop.f32.mrb[54].mxu0  ;;  %1328 = vmatmul.mubr.f32.gmra.mrb[98].mxu1 %v816_v30 }
 0x1ae   :  { %v821_v52 = vmax.f32 %v682_v42, 0.0  ;;  %v429_v53 = vadd.f32 %v428_v44, %v2967_v50  ;;  %v430_v21 = vpop.f32.mrb[55].mxu0  ;;  %v685_v54 = vpop.f32.mrb[54].mxu1 }
 0x1af   :  { %v431_v7 = vadd.f32 %v430_v21, %v2970_v0  ;;  %v686_v9 = vadd.f32 %v685_v54, %v3032_v13  ;;  %1107 = vmatprep.mubr.f32.mxu0 %v819_v2  ;;  %v687_v56 = vpop.f32.mrb[55].mxu1 }
 0x1b0   :  { %v688_v60 = vadd.f32 %v687_v56, %v3038_v19  ;;  %1108 = vmatmul.mubr.f32.gmra.mrb[116].mxu0 %v818_v47  ;;  %1332 = vmatprep.mubr.f32.mxu1 %v821_v52  ;;  %v822_v4 = vmax.f32 %v429_v53, 0.0 }
 0x1b1   :  { %v823_v61 = vmax.f32 %v431_v7, 0.0  ;;  %v824_v39 = vmax.f32 %v686_v9, 0.0  ;;  %v434_v63 = vpop.f32.mrb[56].mxu0  ;;  %1333 = vmatmul.mubr.f32.gmra.mrb[100].mxu1 %v820_v34 }
 0x1b2   :  { %v825_v16 = vmax.f32 %v688_v60, 0.0  ;;  %v435_v37 = vadd.f32 %v434_v63, %v2967_v50  ;;  %v436_v6 = vpop.f32.mrb[57].mxu0  ;;  %v691_v8 = vpop.f32.mrb[56].mxu1 }
 0x1b3   :  { %v437_v26 = vadd.f32 %v436_v6, %v2970_v0  ;;  %v692_v10 = vadd.f32 %v691_v8, %v3032_v13  ;;  %1112 = vmatprep.mubr.f32.mxu0 %v823_v61  ;;  %v693_v15 = vpop.f32.mrb[57].mxu1  ;;  %v526_v61 = vadd.f32 %v2976_v57, %v3038_v19 }
 0x1b4   :  { %v694_v12 = vadd.f32 %v693_v15, %v3038_v19  ;;  %1113 = vmatmul.mubr.f32.gmra.mrb[118].mxu0 %v822_v4  ;;  %1337 = vmatprep.mubr.f32.mxu1 %v825_v16  ;;  %v826_v43 = vmax.f32 %v435_v37, 0.0  ;;  %v530_v15 = vadd.f32 %v2979_v1, %v3032_v13 }
 0x1b5   :  { %v827_v23 = vmax.f32 %v437_v26, 0.0  ;;  %v828_v20 = vmax.f32 %v692_v10, 0.0  ;;  %v440_v51 = vpop.f32.mrb[58].mxu0  ;;  %1338 = vmatmul.mubr.f32.gmra.mrb[102].mxu1 %v824_v39  ;;  %v717_v10 = vmax.f32 %v526_v61, 0.0  ;;  %v3190_v61 = vld [vmem:[%s3608_s4] ss:$0 sm:$0xff] }
 0x1b6   :  { %v829_v22 = vmax.f32 %v694_v12, 0.0  ;;  %v441_v24 = vadd.f32 %v440_v51, %v2967_v50  ;;  %v442_v27 = vpop.f32.mrb[59].mxu0  ;;  %v697_v29 = vpop.f32.mrb[58].mxu1  ;;  %v544_v51 = vadd.f32 %v2998_v28, %v3038_v19  ;;  %v548_v28 = vadd.f32 %v3002_v35, %v3032_v13 }
 0x1b7   :  { %v443_v31 = vadd.f32 %v442_v27, %v2970_v0  ;;  %v698_v30 = vadd.f32 %v697_v29, %v3032_v13  ;;  %1117 = vmatprep.mubr.f32.mxu0 %v827_v23  ;;  %v699_v32 = vpop.f32.mrb[59].mxu1  ;;  %v538_v23 = vadd.f32 %v2990_v18, %v3038_v19  ;;  %v542_v27 = vadd.f32 %v2995_v25, %v3032_v13 }
 0x1b8   :  { %v700_v48 = vadd.f32 %v699_v32, %v3038_v19  ;;  %1118 = vmatmul.mubr.f32.gmra.mrb[120].mxu0 %v826_v43  ;;  %1342 = vmatprep.mubr.f32.mxu1 %v829_v22  ;;  %v830_v36 = vmax.f32 %v441_v24, 0.0  ;;  %v1395_v43 = vld [vmem:[#allocation8] sm:$0xff]  ;;  %v1396_v22 = vld [vmem:[#allocation8 + $0x8] sm:$0xff]  ;;  %v729_v18 = vmax.f32 %v544_v51, 0.0  ;;  %v550_v29 = vadd.f32 %v3006_v38, %v3038_v19 }
 0x1b9   :  { %v831_v58 = vmax.f32 %v443_v31, 0.0  ;;  %v832_v17 = vmax.f32 %v698_v30, 0.0  ;;  %v446_v33 = vpop.f32.mrb[60].mxu0  ;;  %1343 = vmatmul.mubr.f32.gmra.mrb[104].mxu1 %v828_v20  ;;  %v536_v20 = vadd.f32 %v2987_v14, %v3032_v13  ;;  %v2304_v24 = vpack.c.bf16 %v1396_v22, %v1395_v43 }
 0x1ba   :  { %v833_v3 = vmax.f32 %v700_v48, 0.0  ;;  %v447_v40 = vadd.f32 %v446_v33, %v2967_v50  ;;  %v448_v41 = vpop.f32.mrb[61].mxu0  ;;  %v703_v42 = vpop.f32.mrb[60].mxu1  ;;  %v728_v14 = vmax.f32 %v542_v27, 0.0  ;;  %v733_v31 = vmax.f32 %v550_v29, 0.0 }
 0x1bb   :  { %v449_v2 = vadd.f32 %v448_v41, %v2970_v0  ;;  %v704_v34 = vadd.f32 %v703_v42, %v3032_v13  ;;  %1122 = vmatprep.mubr.f32.mxu0 %v831_v58  ;;  %v705_v44 = vpop.f32.mrb[61].mxu1  ;;  %v724_v1 = vmax.f32 %v536_v20, 0.0  ;;  %2305 = vmatprep.subr.bf16.mxu1 %v2304_v24  ;;  %v556_v30 = vadd.f32 %v3014_v49, %v3038_v19  ;;  %v1397_v58 = vld [vmem:[#allocation8 + $0x10] sm:$0xff]  ;;  %v1399_v42 = vld [vmem:[#allocation8 + $0x20] sm:$0xff] }
 0x1bc   :  { %v706_v47 = vadd.f32 %v705_v44, %v3038_v19  ;;  %1123 = vmatmul.mubr.f32.gmra.mrb[122].mxu0 %v830_v36  ;;  %1347 = vmatprep.mubr.f32.mxu1 %v833_v3  ;;  %v834_v54 = vmax.f32 %v447_v40, 0.0  ;;  %v732_v32 = vmax.f32 %v548_v28, 0.0  ;;  %v554_v25 = vadd.f32 %v3010_v45, %v3032_v13  ;;  %v1403_v44 = vld [vmem:[#allocation8 + $0x40] sm:$0xff] }
 0x1bd   :  { %v835_v52 = vmax.f32 %v449_v2, 0.0  ;;  %v836_v53 = vmax.f32 %v704_v34, 0.0  ;;  %v452_v21 = vpop.f32.mrb[62].mxu0  ;;  %1348 = vmatmul.mubr.f32.gmra.mrb[106].mxu1 %v832_v17  ;;  %v737_v48 = vmax.f32 %v556_v30, 0.0  ;;  %v562_v38 = vadd.f32 %v3023_v62, %v3038_v19  ;;  %v1398_v17 = vld [vmem:[#allocation8 + $0x18] sm:$0xff]  ;;  %v1400_v2 = vld [vmem:[#allocation8 + $0x28] sm:$0xff] }
 0x1be   :  { %v837_v7 = vmax.f32 %v706_v47, 0.0  ;;  %v453_v9 = vadd.f32 %v452_v21, %v2967_v50  ;;  %v454_v56 = vpop.f32.mrb[63].mxu0  ;;  %v709_v60 = vpop.f32.mrb[62].mxu1  ;;  %v524_v50 = vadd.f32 %v2973_v55, %v3032_v13  ;;  %v720_v55 = vmax.f32 %v530_v15, 0.0  ;;  %2307 = vmatpush3.bf16.msra.mxu1 %v2304_v24  ;;  %v1401_v34 = vld [vmem:[#allocation8 + $0x30] sm:$0xff]  ;;  %v1404_v47 = vld [vmem:[#allocation8 + $0x48] sm:$0xff] }
 0x1bf   :  { %v455_v39 = vadd.f32 %v454_v56, %v2970_v0  ;;  %v710_v63 = vadd.f32 %v709_v60, %v3032_v13  ;;  %1127 = vmatprep.mubr.f32.mxu0 %v835_v52  ;;  %v711_v4 = vpop.f32.mrb[63].mxu1  ;;  %v532_v0 = vadd.f32 %v2982_v5, %v3038_v19  ;;  %v725_v5 = vmax.f32 %v538_v23, 0.0  ;;  %v1407_v21 = vld [vmem:[#allocation8 + $0x60] sm:$0xff]  ;;  %v1410_v56 = vld [vmem:[#allocation8 + $0x78] sm:$0xff] }
 0x1c0   :  { %v712_v16 = vadd.f32 %v711_v4, %v3038_v19  ;;  %1128 = vmatmul.mubr.f32.gmra.mrb[124].mxu0 %v834_v54  ;;  %1352 = vmatprep.mubr.f32.mxu1 %v837_v7  ;;  %v838_v8 = vmax.f32 %v453_v9, 0.0  ;;  %v716_v57 = vmax.f32 %v524_v50, 0.0  ;;  %v2308_v33 = vpack.c.bf16 %v1398_v17, %v1397_v58  ;;  %v1408_v54 = vld [vmem:[#allocation8 + $0x68] sm:$0xff]  ;;  %v1409_v9 = vld [vmem:[#allocation8 + $0x70] sm:$0xff] }
 0x1c1   :  { %v839_v37 = vmax.f32 %v455_v39, 0.0  ;;  %v840_v6 = vmax.f32 %v710_v63, 0.0  ;;  %1353 = vmatmul.mubr.f32.gmra.mrb[108].mxu1 %v836_v53  ;;  %v721_v12 = vmax.f32 %v532_v0, 0.0  ;;  %v736_v35 = vmax.f32 %v554_v25, 0.0 }
 0x1c2   :  { %v841_v26 = vmax.f32 %v712_v16, 0.0  ;;  %v560_v36 = vadd.f32 %v3018_v59, %v3032_v13  ;;  %v741_v49 = vmax.f32 %v562_v38, 0.0  ;;  %v568_v3 = vadd.f32 %v3035_v46, %v3038_v19  ;;  %2309 = vmatprep.subr.bf16.mxu1 %v2308_v33  ;;  %v1402_v46 = vld [vmem:[#allocation8 + $0x38] sm:$0xff] }
 0x1c3   :  { %1132 = vmatprep.mubr.f32.mxu0 %v839_v37  ;;  %2311 = vmatpush3.bf16.msra.mxu1 %v2308_v33  ;;  %v566_v62 = vadd.f32 %v3028_v11, %v3032_v13  ;;  %v2312_v59 = vpack.c.bf16 %v1400_v2, %v1399_v42  ;;  %v2316_v19 = vpack.c.bf16 %v1402_v46, %v1401_v34  ;;  %v1405_v11 = vld [vmem:[#allocation8 + $0x50] sm:$0xff]  ;;  %v1406_v13 = vld [vmem:[#allocation8 + $0x58] sm:$0xff] }
 0x1c4   :  { %1133 = vmatmul.mubr.f32.gmra.mrb[126].mxu0 %v838_v8  ;;  %1357 = vmatprep.mubr.f32.mxu1 %v841_v26  ;;  %v740_v45 = vmax.f32 %v560_v36, 0.0  ;;  %v745_v40 = vmax.f32 %v568_v3, 0.0  ;;  %v2320_v52 = vpack.c.bf16 %v1404_v47, %v1403_v44  ;;  %v2324_v53 = vpack.c.bf16 %v1406_v13, %v1405_v11 }
 0x1c5   :  { %1202 = vmatprep.mubr.f32.mxu0 %v717_v10  ;;  %1358 = vmatmul.mubr.f32.gmra.mrb[110].mxu1 %v840_v6  ;;  %v744_v41 = vmax.f32 %v566_v62, 0.0  ;;  %v2328_v7 = vpack.c.bf16 %v1408_v54, %v1407_v21  ;;  %v2332_v60 = vpack.c.bf16 %v1410_v56, %v1409_v9 }
 0x1c6   :  { %2313 = vmatprep.subr.bf16.mxu1 %v2312_v59 }
 0x1c7   :  { %2315 = vmatpush3.bf16.msra.mxu1 %v2312_v59 }
 0x1c8   :  { %1203 = vmatmul.mubr.f32.vlgmr.msra.gmra.mrb[64].mxu0 %v716_v57  ;;  %2317 = vmatprep.subr.bf16.mxu1 %v2316_v19 }
 0x1c9   :  { %1207 = vmatprep.mubr.f32.mxu0 %v721_v12 }
 0x1cb   :  { %2319 = vmatpush3.bf16.msra.mxu1 %v2316_v19 }
 0x1cc   :  { %1208 = vmatmul.mubr.f32.gmra.mrb[66].mxu0 %v720_v55  ;;  %2321 = vmatprep.subr.bf16.mxu1 %v2320_v52 }
 0x1cd   :  { %1212 = vmatprep.mubr.f32.mxu0 %v725_v5 }
 0x1cf   :  { %2323 = vmatpush3.bf16.msra.mxu1 %v2320_v52 }
 0x1d0   :  { %1213 = vmatmul.mubr.f32.gmra.mrb[68].mxu0 %v724_v1  ;;  %2325 = vmatprep.subr.bf16.mxu1 %v2324_v53 }
 0x1d1   :  { %1217 = vmatprep.mubr.f32.mxu0 %v729_v18 }
 0x1d3   :  { %2327 = vmatpush3.bf16.msra.mxu1 %v2324_v53 }
 0x1d4   :  { %1218 = vmatmul.mubr.f32.gmra.mrb[70].mxu0 %v728_v14  ;;  %2329 = vmatprep.subr.bf16.mxu1 %v2328_v7 }
 0x1d5   :  { %1222 = vmatprep.mubr.f32.mxu0 %v733_v31 }
 0x1d7   :  { %2331 = vmatpush3.bf16.msra.mxu1 %v2328_v7 }
 0x1d8   :  { %1223 = vmatmul.mubr.f32.gmra.mrb[72].mxu0 %v732_v32  ;;  %2333 = vmatprep.subr.bf16.mxu1 %v2332_v60 }
 0x1d9   :  { %1227 = vmatprep.mubr.f32.mxu0 %v737_v48 }
 0x1db   :  { %2335 = vmatpush3.bf16.msra.mxu1 %v2332_v60 }
 0x1dc   :  { %1228 = vmatmul.mubr.f32.gmra.mrb[74].mxu0 %v736_v35 }
 0x1dd   :  { %1232 = vmatprep.mubr.f32.mxu0 %v741_v49 }
 0x1e0   :  { %1233 = vmatmul.mubr.f32.gmra.mrb[76].mxu0 %v740_v45 }
 0x1e1   :  { %1237 = vmatprep.mubr.f32.mxu0 %v745_v40 }
 0x1e4   :  { %1238 = vmatmul.mubr.f32.gmra.mrb[78].mxu0 %v744_v41 }
 0x23b   :  { %v1019_v39 = vpop.f32.mrb[80].mxu0 }
 0x23c   :  { %v1020_v63 = vadd.f32 %v3190_v61, %v1019_v39  ;;  %v1021_v4 = vpop.f32.mrb[81].mxu0  ;;  %v1244_v16 = vpop.f32.mrb[64].mxu1 }
 0x23d   :  { %v1246_v37 = vpop.f32.mrb[65].mxu1 }
 0x23e   :  { %v3193_v6 = vadd.f32 %v1244_v16, %v1020_v63 }
 0x23f   :  { %v1024_v50 = vpop.f32.mrb[82].mxu0 }
 0x240   :  { %v1025_v8 = vadd.f32 %v3190_v61, %v1024_v50  ;;  %v1026_v26 = vpop.f32.mrb[83].mxu0  ;;  %v1249_v10 = vpop.f32.mrb[66].mxu1 }
 0x241   :  { %v1251_v0 = vpop.f32.mrb[67].mxu1 }
 0x242   :  { %v3196_v57 = vadd.f32 %v1249_v10, %v1025_v8 }
 0x243   :  { %v1029_v15 = vpop.f32.mrb[84].mxu0 }
 0x244   :  { %v1030_v12 = vadd.f32 %v3190_v61, %v1029_v15  ;;  %v1031_v23 = vpop.f32.mrb[85].mxu0  ;;  %v1254_v55 = vpop.f32.mrb[68].mxu1 }
 0x245   :  { %v1256_v20 = vpop.f32.mrb[69].mxu1 }
 0x246   :  { %v3199_v5 = vadd.f32 %v1254_v55, %v1030_v12 }
 0x247   :  { %v1034_v51 = vpop.f32.mrb[86].mxu0 }
 0x248   :  { %v1035_v43 = vadd.f32 %v3190_v61, %v1034_v51  ;;  %v1036_v22 = vpop.f32.mrb[87].mxu0  ;;  %v1259_v24 = vpop.f32.mrb[70].mxu1 }
 0x249   :  { %v1261_v1 = vpop.f32.mrb[71].mxu1 }
 0x24a   :  { %v3202_v27 = vadd.f32 %v1259_v24, %v1035_v43 }
 0x24b   :  { %v1039_v18 = vpop.f32.mrb[88].mxu0 }
 0x24c   :  { %v1040_v29 = vadd.f32 %v3190_v61, %v1039_v18  ;;  %v1041_v14 = vpop.f32.mrb[89].mxu0  ;;  %v1264_v28 = vpop.f32.mrb[72].mxu1 }
 0x24d   :  { %v1266_v31 = vpop.f32.mrb[73].mxu1 }
 0x24e   :  { %v3205_v30 = vadd.f32 %v1264_v28, %v1040_v29 }
 0x24f   :  { %v1044_v32 = vpop.f32.mrb[90].mxu0 }
 0x250   :  { %v1045_v25 = vadd.f32 %v3190_v61, %v1044_v32  ;;  %v1046_v48 = vpop.f32.mrb[91].mxu0  ;;  %v1269_v38 = vpop.f32.mrb[74].mxu1 }
 0x251   :  { %v1271_v58 = vpop.f32.mrb[75].mxu1 }
 0x252   :  { %v3208_v17 = vadd.f32 %v1269_v38, %v1045_v25 }
 0x253   :  { %v1049_v33 = vpop.f32.mrb[92].mxu0 }
 0x254   :  { %v1050_v35 = vadd.f32 %v3190_v61, %v1049_v33  ;;  %v1051_v36 = vpop.f32.mrb[93].mxu0  ;;  %v1274_v49 = vpop.f32.mrb[76].mxu1 }
 0x255   :  { %v1276_v3 = vpop.f32.mrb[77].mxu1 }
 0x256   :  { %v3211_v45 = vadd.f32 %v1274_v49, %v1050_v35 }
 0x257   :  { %v1054_v62 = vpop.f32.mrb[94].mxu0 }
 0x258   :  { %v1055_v40 = vadd.f32 %v3190_v61, %v1054_v62  ;;  %v1056_v41 = vpop.f32.mrb[95].mxu0  ;;  %v1279_v42 = vpop.f32.mrb[78].mxu1 }
 0x259   :  { %v1281_v2 = vpop.f32.mrb[79].mxu1 }
 0x25a   :  { %v3214_v59 = vadd.f32 %v1279_v42, %v1055_v40 }
 0x25b   :  { %v1059_v34 = vpop.f32.mrb[96].mxu0 }
 0x25c   :  { %v1060_v46 = vadd.f32 %v3190_v61, %v1059_v34  ;;  %v1061_v19 = vpop.f32.mrb[97].mxu0  ;;  %v1284_v44 = vpop.f32.mrb[80].mxu1 }
 0x25d   :  { %v1286_v47 = vpop.f32.mrb[81].mxu1 }
 0x25e   :  { %v3217_v52 = vadd.f32 %v1284_v44, %v1060_v46 }
 0x25f   :  { %v1064_v11 = vpop.f32.mrb[98].mxu0 }
 0x260   :  { %v1065_v13 = vadd.f32 %v3190_v61, %v1064_v11  ;;  %v1066_v53 = vpop.f32.mrb[99].mxu0  ;;  %v1289_v21 = vpop.f32.mrb[82].mxu1 }
 0x261   :  { %v1291_v54 = vpop.f32.mrb[83].mxu1 }
 0x262   :  { %v3220_v7 = vadd.f32 %v1289_v21, %v1065_v13 }
 0x263   :  { %v1069_v9 = vpop.f32.mrb[100].mxu0 }
 0x264   :  { %v1070_v56 = vadd.f32 %v3190_v61, %v1069_v9  ;;  %v1071_v60 = vpop.f32.mrb[101].mxu0  ;;  %v1294_v39 = vpop.f32.mrb[84].mxu1 }
 0x265   :  { %v1296_v63 = vpop.f32.mrb[85].mxu1 }
 0x266   :  { %v3223_v4 = vadd.f32 %v1294_v39, %v1070_v56 }
 0x267   :  { %v1074_v16 = vpop.f32.mrb[102].mxu0 }
 0x268   :  { %v1075_v37 = vadd.f32 %v3190_v61, %v1074_v16  ;;  %v1076_v50 = vpop.f32.mrb[103].mxu0  ;;  %v1299_v8 = vpop.f32.mrb[86].mxu1 }
 0x269   :  { %v1301_v26 = vpop.f32.mrb[87].mxu1 }
 0x26a   :  { %v3226_v10 = vadd.f32 %v1299_v8, %v1075_v37 }
 0x26b   :  { %v1079_v0 = vpop.f32.mrb[104].mxu0 }
 0x26c   :  { %v1080_v15 = vadd.f32 %v3190_v61, %v1079_v0  ;;  %v1081_v12 = vpop.f32.mrb[105].mxu0  ;;  %v1304_v23 = vpop.f32.mrb[88].mxu1 }
 0x26d   :  { %v1306_v55 = vpop.f32.mrb[89].mxu1 }
 0x26e   :  { %v3229_v20 = vadd.f32 %v1304_v23, %v1080_v15 }
 0x26f   :  { %v1084_v51 = vpop.f32.mrb[106].mxu0 }
 0x270   :  { %v1085_v43 = vadd.f32 %v3190_v61, %v1084_v51  ;;  %v1086_v22 = vpop.f32.mrb[107].mxu0  ;;  %v1309_v24 = vpop.f32.mrb[90].mxu1 }
 0x271   :  { %v1311_v1 = vpop.f32.mrb[91].mxu1 }
 0x272   :  { %v3232_v18 = vadd.f32 %v1309_v24, %v1085_v43 }
 0x273   :  { %v1089_v29 = vpop.f32.mrb[108].mxu0 }
 0x274   :  { %v1090_v14 = vadd.f32 %v3190_v61, %v1089_v29  ;;  %v1091_v28 = vpop.f32.mrb[109].mxu0  ;;  %v1314_v31 = vpop.f32.mrb[92].mxu1 }
 0x275   :  { %v1316_v32 = vpop.f32.mrb[93].mxu1 }
 0x276   :  { %v3235_v25 = vadd.f32 %v1314_v31, %v1090_v14 }
 0x277   :  { %v1094_v48 = vpop.f32.mrb[110].mxu0 }
 0x278   :  { %v1095_v38 = vadd.f32 %v3190_v61, %v1094_v48  ;;  %v1096_v58 = vpop.f32.mrb[111].mxu0  ;;  %v1319_v33 = vpop.f32.mrb[94].mxu1 }
 0x279   :  { %v1321_v35 = vpop.f32.mrb[95].mxu1 }
 0x27a   :  { %v3238_v36 = vadd.f32 %v1319_v33, %v1095_v38 }
 0x27b   :  { %v1099_v49 = vpop.f32.mrb[112].mxu0 }
 0x27c   :  { %v1100_v3 = vadd.f32 %v3190_v61, %v1099_v49  ;;  %v1101_v62 = vpop.f32.mrb[113].mxu0  ;;  %v1324_v40 = vpop.f32.mrb[96].mxu1 }
 0x27d   :  { %v1326_v41 = vpop.f32.mrb[97].mxu1 }
 0x27e   :  { %v3241_v42 = vadd.f32 %v1324_v40, %v1100_v3 }
 0x27f   :  { %v1104_v2 = vpop.f32.mrb[114].mxu0 }
 0x280   :  { %v1105_v34 = vadd.f32 %v3190_v61, %v1104_v2  ;;  %v1106_v46 = vpop.f32.mrb[115].mxu0  ;;  %v1329_v19 = vpop.f32.mrb[98].mxu1 }
 0x281   :  { %v1331_v44 = vpop.f32.mrb[99].mxu1 }
 0x282   :  { %v3244_v47 = vadd.f32 %v1329_v19, %v1105_v34 }
 0x283   :  { %v1109_v11 = vpop.f32.mrb[116].mxu0 }
 0x284   :  { %v1110_v13 = vadd.f32 %v3190_v61, %v1109_v11  ;;  %v1111_v53 = vpop.f32.mrb[117].mxu0  ;;  %v1334_v21 = vpop.f32.mrb[100].mxu1 }
 0x285   :  { %v1336_v54 = vpop.f32.mrb[101].mxu1 }
 0x286   :  { %v3247_v9 = vadd.f32 %v1334_v21, %v1110_v13 }
 0x287   :  { %v1114_v56 = vpop.f32.mrb[118].mxu0 }
 0x288   :  { %v1115_v60 = vadd.f32 %v3190_v61, %v1114_v56  ;;  %v1116_v39 = vpop.f32.mrb[119].mxu0  ;;  %v1339_v63 = vpop.f32.mrb[102].mxu1 }
 0x289   :  { %v1341_v16 = vpop.f32.mrb[103].mxu1 }
 0x28a   :  { %v3250_v37 = vadd.f32 %v1339_v63, %v1115_v60 }
 0x28b   :  { %v1119_v50 = vpop.f32.mrb[120].mxu0 }
 0x28c   :  { %v1120_v8 = vadd.f32 %v3190_v61, %v1119_v50  ;;  %v1121_v26 = vpop.f32.mrb[121].mxu0  ;;  %v1344_v0 = vpop.f32.mrb[104].mxu1 }
 0x28d   :  { %v1346_v15 = vpop.f32.mrb[105].mxu1 }
 0x28e   :  { %v3253_v12 = vadd.f32 %v1344_v0, %v1120_v8 }
 0x28f   :  { %v1124_v23 = vpop.f32.mrb[122].mxu0 }
 0x290   :  { %v1125_v55 = vadd.f32 %v3190_v61, %v1124_v23  ;;  %v1126_v51 = vpop.f32.mrb[123].mxu0  ;;  %v1349_v43 = vpop.f32.mrb[106].mxu1 }
 0x291   :  { %v1351_v22 = vpop.f32.mrb[107].mxu1 }
 0x292   :  { %v3256_v24 = vadd.f32 %v1349_v43, %v1125_v55 }
 0x293   :  { %v1129_v1 = vpop.f32.mrb[124].mxu0 }
 0x294   :  { %v1130_v29 = vadd.f32 %v3190_v61, %v1129_v1  ;;  %v1131_v14 = vpop.f32.mrb[125].mxu0  ;;  %v1354_v28 = vpop.f32.mrb[108].mxu1 }
 0x295   :  { %v1356_v31 = vpop.f32.mrb[109].mxu1 }
 0x296   :  { %v3259_v32 = vadd.f32 %v1354_v28, %v1130_v29  ;;  %v1371_v28 = vmax.f32 %v3193_v6, 0.0  ;;  %v1372_v31 = vmax.f32 %v3196_v57, 0.0  ;;  %v1378_v6 = vmax.f32 %v3214_v59, 0.0 }
 0x297   :  { %v1134_v48 = vpop.f32.mrb[126].mxu0  ;;  %v1379_v57 = vmax.f32 %v3217_v52, 0.0  ;;  %v1385_v59 = vmax.f32 %v3235_v25, 0.0  ;;  %v1386_v52 = vmax.f32 %v3238_v36, 0.0  ;;  %v1392_v25 = vmax.f32 %v3256_v24, 0.0 }
 0x298   :  { %v1135_v38 = vadd.f32 %v3190_v61, %v1134_v48  ;;  %v1136_v58 = vpop.f32.mrb[127].mxu0  ;;  %v1359_v33 = vpop.f32.mrb[110].mxu1  ;;  %v1373_v48 = vmax.f32 %v3199_v5, 0.0  ;;  %v1380_v5 = vmax.f32 %v3220_v7, 0.0  ;;  %v1387_v7 = vmax.f32 %v3241_v42, 0.0 }
 0x299   :  { %v1361_v35 = vpop.f32.mrb[111].mxu1  ;;  %v1375_v58 = vmax.f32 %v3205_v30, 0.0  ;;  %v1382_v30 = vmax.f32 %v3226_v10, 0.0  ;;  %v1389_v10 = vmax.f32 %v3247_v9, 0.0  ;;  %v1393_v36 = vmax.f32 %v3259_v32, 0.0 }
 0x29a   :  { %v3262_v49 = vadd.f32 %v1359_v33, %v1135_v38  ;;  %v1374_v38 = vmax.f32 %v3202_v27, 0.0  ;;  %v1377_v33 = vmax.f32 %v3211_v45, 0.0  ;;  %v1381_v27 = vmax.f32 %v3223_v4, 0.0 }
 0x29b   :  { %v1204_v3 = vpop.f32.mrb[64].mxu0  ;;  %v1384_v45 = vmax.f32 %v3232_v18, 0.0  ;;  %v1388_v4 = vmax.f32 %v3244_v47, 0.0  ;;  %v1391_v18 = vmax.f32 %v3253_v12, 0.0  ;;  %v3299_v47 = vld [vmem:[%s3610_s6] ss:$0 sm:$0xff] }
 0x29c   :  { %v2368_v62 = vadd.f32 %v3190_v61, %v1204_v3  ;;  %v1206_v40 = vpop.f32.mrb[65].mxu0  ;;  %v1394_v42 = vmax.f32 %v3262_v49, 0.0  ;;  %s2707_s6 = smov [#allocation10]  }
 0x29d   :  { %s2000_s8 = sshll.u32 %s2707_s6, 4  ;;  %s2001_s8 = int_to_ptr.vmem [resolvable:$true] %s2000_s8 }
 0x29e   :  { %v1363_v41 = vmax.f32 %v2368_v62, 0.0  ;;  %s2667_s9 = scalar_lea.vmem %s2001_s8, 4096  ;;  %p2672_p5 = scmp.lt.s32.totalorder %s2001_s8, %s2001_s8 }
 0x29f   :  { %v1209_v2 = vpop.f32.mrb[66].mxu0  ;;  %p2668_p4 = scmp.ne.s32.totalorder %s2001_s8, %s2667_s9  ;;  %p2673_p6 = scmp.lt.s32.totalorder %s2667_s9, %s2667_s9 }
 0x2a0   :  { %v2369_v34 = vadd.f32 %v3190_v61, %v1209_v2  ;;  %v1211_v46 = vpop.f32.mrb[67].mxu0  ;;  %2096 = vmatprep.mubr.f32.mxu1 %v1363_v41 }
 0x2a1   :  { %p2674_p7 = por %p2673_p6, %p2672_p5 }
 0x2a2   :  { %v1364_v19 = vmax.f32 %v2369_v34, 0.0 }
 0x2a3   :  { %v1214_v44 = vpop.f32.mrb[68].mxu0  ;;  %p2675_p8 = pnand %p2674_p7, %p2668_p4 }
 0x2a4   :  { %v2370_v11 = vadd.f32 %v3190_v61, %v1214_v44  ;;  %v1216_v13 = vpop.f32.mrb[69].mxu0  ;;  %2097 = vmatmul.mubr.f32.vlgmr.msra.gmra.mrb[112].mxu1 %v1364_v19 }
 0x2a6   :  { %v1365_v53 = vmax.f32 %v2370_v11, 0.0 }
 0x2a7   :  { %v1219_v21 = vpop.f32.mrb[70].mxu0 }
 0x2a8   :  { %v2371_v54 = vadd.f32 %v3190_v61, %v1219_v21  ;;  %v1221_v56 = vpop.f32.mrb[71].mxu0  ;;  %2099 = vmatprep.mubr.f32.mxu1 %v1365_v53 }
 0x2aa   :  { %v1366_v60 = vmax.f32 %v2371_v54, 0.0 }
 0x2ab   :  { %v1224_v39 = vpop.f32.mrb[72].mxu0 }
 0x2ac   :  { %v2372_v63 = vadd.f32 %v3190_v61, %v1224_v39  ;;  %v1226_v16 = vpop.f32.mrb[73].mxu0  ;;  %2100 = vmatmul.mubr.f32.gmra.mrb[114].mxu1 %v1366_v60 }
 0x2ae   :  { %v1367_v50 = vmax.f32 %v2372_v63, 0.0 }
 0x2af   :  { %v1229_v8 = vpop.f32.mrb[74].mxu0 }
 0x2b0   :  { %v2373_v26 = vadd.f32 %v3190_v61, %v1229_v8  ;;  %v1231_v0 = vpop.f32.mrb[75].mxu0  ;;  %2102 = vmatprep.mubr.f32.mxu1 %v1367_v50 }
 0x2b2   :  { %v1368_v15 = vmax.f32 %v2373_v26, 0.0 }
 0x2b3   :  { %v1234_v23 = vpop.f32.mrb[76].mxu0 }
 0x2b4   :  { %v2374_v55 = vadd.f32 %v3190_v61, %v1234_v23  ;;  %v1236_v51 = vpop.f32.mrb[77].mxu0  ;;  %2103 = vmatmul.mubr.f32.gmra.mrb[116].mxu1 %v1368_v15 }
 0x2b6   :  { %v1369_v43 = vmax.f32 %v2374_v55, 0.0 }
 0x2b7   :  { %v1239_v22 = vpop.f32.mrb[78].mxu0 }
 0x2b8   :  { %v2375_v1 = vadd.f32 %v3190_v61, %v1239_v22  ;;  %v1241_v29 = vpop.f32.mrb[79].mxu0  ;;  %2105 = vmatprep.mubr.f32.mxu1 %v1369_v43  ;;  %v1376_v61 = vmax.f32 %v3208_v17, 0.0  ;;  %v1383_v17 = vmax.f32 %v3229_v20, 0.0  ;;  %v1390_v20 = vmax.f32 %v3250_v37, 0.0 }
 0x2ba   :  { %v1370_v14 = vmax.f32 %v2375_v1, 0.0 }
 0x2bc   :  { %2106 = vmatmul.mubr.f32.gmra.mrb[118].mxu1 %v1370_v14 }
 0x2bd   :  { %2108 = vmatprep.mubr.f32.mxu1 %v1371_v28 }
 0x2c0   :  { %2109 = vmatmul.mubr.f32.gmra.mrb[120].mxu1 %v1372_v31 }
 0x2c1   :  { %2111 = vmatprep.mubr.f32.mxu1 %v1373_v48 }
 0x2c4   :  { %2112 = vmatmul.mubr.f32.gmra.mrb[122].mxu1 %v1374_v38 }
 0x2c5   :  { %2114 = vmatprep.mubr.f32.mxu1 %v1375_v58 }
 0x2c8   :  { %2115 = vmatmul.mubr.f32.gmra.mrb[124].mxu1 %v1376_v61 }
 0x2c9   :  { %2117 = vmatprep.mubr.f32.mxu1 %v1377_v33 }
 0x2cc   :  { %2118 = vmatmul.mubr.f32.gmra.mrb[126].mxu1 %v1378_v6 }
 0x2cd   :  { %2120 = vmatprep.mubr.f32.mxu1 %v1379_v57 }
 0x2d0   :  { %2121 = vmatmul.mubr.f32.gmra.mrb[128].mxu1 %v1380_v5 }
 0x2d1   :  { %2123 = vmatprep.mubr.f32.mxu1 %v1381_v27 }
 0x2d4   :  { %2124 = vmatmul.mubr.f32.gmra.mrb[130].mxu1 %v1382_v30 }
 0x2d5   :  { %2126 = vmatprep.mubr.f32.mxu1 %v1383_v17 }
 0x2d8   :  { %2127 = vmatmul.mubr.f32.gmra.mrb[132].mxu1 %v1384_v45 }
 0x2d9   :  { %2129 = vmatprep.mubr.f32.mxu1 %v1385_v59 }
 0x2dc   :  { %2130 = vmatmul.mubr.f32.gmra.mrb[134].mxu1 %v1386_v52 }
 0x2dd   :  { %2132 = vmatprep.mubr.f32.mxu1 %v1387_v7 }
 0x2e0   :  { %2133 = vmatmul.mubr.f32.gmra.mrb[136].mxu1 %v1388_v4 }
 0x2e1   :  { %2135 = vmatprep.mubr.f32.mxu1 %v1389_v10 }
 0x2e4   :  { %2136 = vmatmul.mubr.f32.gmra.mrb[138].mxu1 %v1390_v20 }
 0x2e5   :  { %2138 = vmatprep.mubr.f32.mxu1 %v1391_v18 }
 0x2e8   :  { %2139 = vmatmul.mubr.f32.gmra.mrb[140].mxu1 %v1392_v25 }
 0x2e9   :  { %2141 = vmatprep.mubr.f32.mxu1 %v1393_v36 }
 0x2ec   :  { %2142 = vmatmul.mubr.f32.gmra.mrb[142].mxu1 %v1394_v42 }
 0x377   :  { %v2098_v9 = vpop.f32.mrb[112].mxu1 }
 0x378   :  { %v3302_v37 = vadd.f32 %v2098_v9, %v3299_v47  ;;  %v1484_v12 = vpop.f32.mrb[113].mxu1 }
 0x379   :  { %v3306_v24 = vadd.f32 %v3299_v47, %v1484_v12 }
 0x37a   :  { %1645 = vmax.xlane.f32.xlu0 %v3302_v37 }
 0x37e   :  { %1643 = vmax.xlane.f32.xlu0 %v3306_v24 }
 0x37f   :  { %v2101_v32 = vpop.f32.mrb[114].mxu1 }
 0x380   :  { %v3310_v35 = vadd.f32 %v2101_v32, %v3299_v47  ;;  %v1494_v49 = vpop.f32.mrb[115].mxu1 }
 0x381   :  { %v3314_v3 = vadd.f32 %v3299_v47, %v1494_v49 }
 0x382   :  { %1649 = vmax.xlane.f32.xlu1 %v3310_v35 }
 0x386   :  { %1647 = vmax.xlane.f32.xlu1 %v3314_v3 }
 0x387   :  { %v2104_v62 = vpop.f32.mrb[116].mxu1 }
 0x388   :  { %v3318_v40 = vadd.f32 %v2104_v62, %v3299_v47  ;;  %v1504_v41 = vpop.f32.mrb[117].mxu1 }
 0x389   :  { %v3321_v2 = vadd.f32 %v3299_v47, %v1504_v41 }
 0x38a   :  { %1653 = vmax.xlane.f32.xlu1 %v3318_v40 }
 0x38b   :  { %1651 = vmax.xlane.f32.xlu0 %v3321_v2 }
 0x38f   :  { %v2107_v34 = vpop.f32.mrb[118].mxu1 }
 0x390   :  { %v3326_v46 = vadd.f32 %v2107_v34, %v3299_v47  ;;  %v1514_v19 = vpop.f32.mrb[119].mxu1 }
 0x391   :  { %v3329_v44 = vadd.f32 %v3299_v47, %v1514_v19 }
 0x392   :  { %1657 = vmax.xlane.f32.xlu1 %v3326_v46 }
 0x393   :  { %1655 = vmax.xlane.f32.xlu0 %v3329_v44  ;;  %v2110_v11 = vpop.f32.mrb[120].mxu1 }
 0x394   :  { %v3334_v13 = vadd.f32 %v2110_v11, %v3299_v47  ;;  %v1524_v53 = vpop.f32.mrb[121].mxu1 }
 0x395   :  { %v3337_v21 = vadd.f32 %v3299_v47, %v1524_v53 }
 0x396   :  { %1661 = vmax.xlane.f32.xlu1 %v3334_v13 }
 0x397   :  { %v2113_v54 = vpop.f32.mrb[122].mxu1  ;;  %1659 = vmax.xlane.f32.xlu0 %v3337_v21 }
 0x398   :  { %v3342_v56 = vadd.f32 %v2113_v54, %v3299_v47  ;;  %v1534_v60 = vpop.f32.mrb[123].mxu1 }
 0x399   :  { %v3345_v39 = vadd.f32 %v3299_v47, %v1534_v60 }
 0x39a   :  { %1665 = vmax.xlane.f32.xlu1 %v3342_v56 }
 0x39b   :  { %v2116_v63 = vpop.f32.mrb[124].mxu1  ;;  %1663 = vmax.xlane.f32.xlu0 %v3345_v39 }
 0x39c   :  { %v3350_v16 = vadd.f32 %v2116_v63, %v3299_v47  ;;  %v1544_v50 = vpop.f32.mrb[125].mxu1 }
 0x39d   :  { %v3353_v8 = vadd.f32 %v3299_v47, %v1544_v50 }
 0x39e   :  { %1669 = vmax.xlane.f32.xlu1 %v3350_v16 }
 0x39f   :  { %v2119_v26 = vpop.f32.mrb[126].mxu1  ;;  %1667 = vmax.xlane.f32.xlu0 %v3353_v8 }
 0x3a0   :  { %v3358_v0 = vadd.f32 %v2119_v26, %v3299_v47  ;;  %v1554_v15 = vpop.f32.mrb[127].mxu1 }
 0x3a1   :  { %v3361_v23 = vadd.f32 %v3299_v47, %v1554_v15 }
 0x3a2   :  { %1673 = vmax.xlane.f32.xlu1 %v3358_v0 }
 0x3a3   :  { %v2122_v55 = vpop.f32.mrb[128].mxu1  ;;  %1671 = vmax.xlane.f32.xlu0 %v3361_v23 }
 0x3a4   :  { %v3366_v51 = vadd.f32 %v2122_v55, %v3299_v47  ;;  %v1564_v43 = vpop.f32.mrb[129].mxu1 }
 0x3a5   :  { %v3369_v22 = vadd.f32 %v3299_v47, %v1564_v43 }
 0x3a6   :  { %1677 = vmax.xlane.f32.xlu1 %v3366_v51 }
 0x3a7   :  { %v2125_v1 = vpop.f32.mrb[130].mxu1  ;;  %1675 = vmax.xlane.f32.xlu0 %v3369_v22 }
 0x3a8   :  { %v3374_v29 = vadd.f32 %v2125_v1, %v3299_v47  ;;  %v1574_v14 = vpop.f32.mrb[131].mxu1 }
 0x3a9   :  { %v3377_v28 = vadd.f32 %v3299_v47, %v1574_v14 }
 0x3aa   :  { %1681 = vmax.xlane.f32.xlu1 %v3374_v29 }
 0x3ab   :  { %v2128_v31 = vpop.f32.mrb[132].mxu1  ;;  %1679 = vmax.xlane.f32.xlu0 %v3377_v28 }
 0x3ac   :  { %v3382_v48 = vadd.f32 %v2128_v31, %v3299_v47  ;;  %v1584_v38 = vpop.f32.mrb[133].mxu1 }
 0x3ad   :  { %v3385_v58 = vadd.f32 %v3299_v47, %v1584_v38 }
 0x3ae   :  { %1685 = vmax.xlane.f32.xlu1 %v3382_v48 }
 0x3af   :  { %v2131_v61 = vpop.f32.mrb[134].mxu1  ;;  %1683 = vmax.xlane.f32.xlu0 %v3385_v58 }
 0x3b0   :  { %v3390_v33 = vadd.f32 %v2131_v61, %v3299_v47  ;;  %v1594_v6 = vpop.f32.mrb[135].mxu1 }
 0x3b1   :  { %v3393_v57 = vadd.f32 %v3299_v47, %v1594_v6 }
 0x3b2   :  { %1689 = vmax.xlane.f32.xlu1 %v3390_v33 }
 0x3b3   :  { %v2134_v5 = vpop.f32.mrb[136].mxu1  ;;  %1687 = vmax.xlane.f32.xlu0 %v3393_v57 }
 0x3b4   :  { %v3398_v27 = vadd.f32 %v2134_v5, %v3299_v47  ;;  %v1604_v30 = vpop.f32.mrb[137].mxu1 }
 0x3b5   :  { %v3401_v17 = vadd.f32 %v3299_v47, %v1604_v30 }
 0x3b6   :  { %1693 = vmax.xlane.f32.xlu1 %v3398_v27 }
 0x3b7   :  { %v2137_v45 = vpop.f32.mrb[138].mxu1  ;;  %1691 = vmax.xlane.f32.xlu0 %v3401_v17 }
 0x3b8   :  { %v3406_v59 = vadd.f32 %v2137_v45, %v3299_v47  ;;  %v1614_v52 = vpop.f32.mrb[139].mxu1 }
 0x3b9   :  { %v3409_v7 = vadd.f32 %v3299_v47, %v1614_v52 }
 0x3ba   :  { %1697 = vmax.xlane.f32.xlu1 %v3406_v59 }
 0x3bb   :  { %v2140_v4 = vpop.f32.mrb[140].mxu1  ;;  %1695 = vmax.xlane.f32.xlu0 %v3409_v7 }
 0x3bc   :  { %v3414_v10 = vadd.f32 %v2140_v4, %v3299_v47  ;;  %v1624_v20 = vpop.f32.mrb[141].mxu1 }
 0x3bd   :  { %v3417_v18 = vadd.f32 %v3299_v47, %v1624_v20 }
 0x3be   :  { %1701 = vmax.xlane.f32.xlu1 %v3414_v10 }
 0x3bf   :  { %v2143_v25 = vpop.f32.mrb[142].mxu1  ;;  %1699 = vmax.xlane.f32.xlu0 %v3417_v18 }
 0x3c0   :  { %v3422_v36 = vadd.f32 %v2143_v25, %v3299_v47  ;;  %v1634_v42 = vpop.f32.mrb[143].mxu1 }
 0x3c1   :  { %v3425_v9 = vadd.f32 %v3299_v47, %v1634_v42 }
 0x3c2   :  { %1705 = vmax.xlane.f32.xlu1 %v3422_v36 }
 0x3c3   :  { %1703 = vmax.xlane.f32.xlu0 %v3425_v9 }
 0x407   :  { %v1646_v12 = vpop.xlane.xlu0 %1645 }
 0x408   :  { %v1708_v32 = vsub.f32 %v3302_v37, %v1646_v12 }
 0x40a   :  { %v1741_v49 = vmul.f32 1.442695, %v1708_v32 }
 0x40b   :  { %v1644_v62 = vpop.xlane.xlu0 %1643 }
 0x40c   :  { %2451 = vpow2.f32 %v1741_v49  ;;  %v1707_v41 = vsub.f32 %v3306_v24, %v1644_v62 }
 0x40e   :  { %v1739_v34 = vmul.f32 1.442695, %v1707_v41 }
 0x40f   :  { %v1650_v19 = vpop.xlane.xlu1 %1649 }
 0x410   :  { %2453 = vpow2.f32 %v1739_v34  ;;  %v1710_v11 = vsub.f32 %v3310_v35, %v1650_v19 }
 0x412   :  { %v1745_v53 = vmul.f32 1.442695, %v1710_v11 }
 0x413   :  { %v1648_v47 = vpop.xlane.xlu1 %1647 }
 0x414   :  { %2455 = vpow2.f32 %v1745_v53  ;;  %v1709_v54 = vsub.f32 %v3314_v3, %v1648_v47 }
 0x416   :  { %v3433_v60 = vpop.eup %2451  ;;  %v1743_v63 = vmul.f32 1.442695, %v1709_v54 }
 0x417   :  { %v1654_v50 = vpop.xlane.xlu1 %1653  ;;  %1805 = vadd.xlane.f32.xlu1 %v3433_v60 }
 0x418   :  { %2457 = vpow2.f32 %v1743_v63  ;;  %v1712_v37 = vsub.f32 %v3318_v40, %v1654_v50  ;;  %v1652_v24 = vpop.xlane.xlu0 %1651 }
 0x419   :  { %v1711_v26 = vsub.f32 %v3321_v2, %v1652_v24 }
 0x41a   :  { %v3438_v15 = vpop.eup %2453  ;;  %v1749_v35 = vmul.f32 1.442695, %v1712_v37 }
 0x41b   :  { %v1747_v55 = vmul.f32 1.442695, %v1711_v26  ;;  %1803 = vadd.xlane.f32.xlu0 %v3438_v15 }
 0x41c   :  { %2459 = vpow2.f32 %v1749_v35 }
 0x41d   :  { %2461 = vpow2.f32 %v1747_v55 }
 0x41e   :  { %v3441_v3 = vpop.eup %2455 }
 0x41f   :  { %v1658_v43 = vpop.xlane.xlu1 %1657  ;;  %1809 = vadd.xlane.f32.xlu1 %v3441_v3 }
 0x420   :  { %v1714_v1 = vsub.f32 %v3326_v46, %v1658_v43  ;;  %v1656_v14 = vpop.xlane.xlu0 %1655 }
 0x421   :  { %v1713_v40 = vsub.f32 %v3329_v44, %v1656_v14 }
 0x422   :  { %v3446_v31 = vpop.eup %2457  ;;  %v1753_v2 = vmul.f32 1.442695, %v1714_v1 }
 0x423   :  { %v1751_v38 = vmul.f32 1.442695, %v1713_v40  ;;  %v1662_v61 = vpop.xlane.xlu1 %1661  ;;  %1807 = vadd.xlane.f32.xlu0 %v3446_v31 }
 0x424   :  { %2463 = vpow2.f32 %v1753_v2  ;;  %v1716_v6 = vsub.f32 %v3334_v13, %v1662_v61  ;;  %v1660_v5 = vpop.xlane.xlu0 %1659 }
 0x425   :  { %2465 = vpow2.f32 %v1751_v38  ;;  %v1715_v30 = vsub.f32 %v3337_v21, %v1660_v5 }
 0x426   :  { %v3451_v45 = vpop.eup %2459  ;;  %v1757_v46 = vmul.f32 1.442695, %v1716_v6 }
 0x427   :  { %v3453_v52 = vpop.eup %2461  ;;  %v1755_v44 = vmul.f32 1.442695, %v1715_v30  ;;  %v1666_v4 = vpop.xlane.xlu1 %1665  ;;  %1813 = vadd.xlane.f32.xlu1 %v3451_v45 }
 0x428   :  { %2467 = vpow2.f32 %v1757_v46  ;;  %v1718_v20 = vsub.f32 %v3342_v56, %v1666_v4  ;;  %1811 = vadd.xlane.f32.xlu0 %v3453_v52  ;;  %v1664_v25 = vpop.xlane.xlu0 %1663 }
 0x429   :  { %2469 = vpow2.f32 %v1755_v44  ;;  %v1717_v13 = vsub.f32 %v3345_v39, %v1664_v25 }
 0x42a   :  { %v1761_v42 = vmul.f32 1.442695, %v1718_v20 }
 0x42b   :  { %v1759_v21 = vmul.f32 1.442695, %v1717_v13  ;;  %v1670_v12 = vpop.xlane.xlu1 %1669 }
 0x42c   :  { %2471 = vpow2.f32 %v1761_v42  ;;  %v1720_v32 = vsub.f32 %v3350_v16, %v1670_v12  ;;  %v1668_v49 = vpop.xlane.xlu0 %1667 }
 0x42d   :  { %2473 = vpow2.f32 %v1759_v21  ;;  %v1719_v62 = vsub.f32 %v3353_v8, %v1668_v49 }
 0x42e   :  { %v3461_v41 = vpop.eup %2463  ;;  %v1765_v34 = vmul.f32 1.442695, %v1720_v32 }
 0x42f   :  { %v3463_v56 = vpop.eup %2465  ;;  %v1763_v19 = vmul.f32 1.442695, %v1719_v62  ;;  %v1674_v11 = vpop.xlane.xlu1 %1673  ;;  %1817 = vadd.xlane.f32.xlu1 %v3461_v41 }
 0x430   :  { %2475 = vpow2.f32 %v1765_v34  ;;  %v1722_v39 = vsub.f32 %v3358_v0, %v1674_v11  ;;  %1815 = vadd.xlane.f32.xlu0 %v3463_v56  ;;  %v1672_v53 = vpop.xlane.xlu0 %1671 }
 0x431   :  { %2477 = vpow2.f32 %v1763_v19  ;;  %v1721_v16 = vsub.f32 %v3361_v23, %v1672_v53 }
 0x432   :  { %v3469_v47 = vpop.eup %2467  ;;  %v1769_v8 = vmul.f32 1.442695, %v1722_v39 }
 0x433   :  { %v3471_v54 = vpop.eup %2469  ;;  %v1767_v63 = vmul.f32 1.442695, %v1721_v16  ;;  %v1678_v50 = vpop.xlane.xlu1 %1677  ;;  %1821 = vadd.xlane.f32.xlu1 %v3469_v47 }
 0x434   :  { %2479 = vpow2.f32 %v1769_v8  ;;  %v1724_v37 = vsub.f32 %v3366_v51, %v1678_v50  ;;  %1819 = vadd.xlane.f32.xlu0 %v3471_v54  ;;  %v1676_v0 = vpop.xlane.xlu0 %1675 }
 0x435   :  { %2481 = vpow2.f32 %v1767_v63  ;;  %v1723_v24 = vsub.f32 %v3369_v22, %v1676_v0 }
 0x436   :  { %v3477_v26 = vpop.eup %2471  ;;  %v1773_v23 = vmul.f32 1.442695, %v1724_v37 }
 0x437   :  { %v3479_v35 = vpop.eup %2473  ;;  %v1771_v55 = vmul.f32 1.442695, %v1723_v24  ;;  %v1682_v43 = vpop.xlane.xlu1 %1681  ;;  %1825 = vadd.xlane.f32.xlu1 %v3477_v26 }
 0x438   :  { %2483 = vpow2.f32 %v1773_v23  ;;  %v1726_v1 = vsub.f32 %v3374_v29, %v1682_v43  ;;  %1823 = vadd.xlane.f32.xlu0 %v3479_v35  ;;  %v1680_v51 = vpop.xlane.xlu0 %1679 }
 0x439   :  { %2485 = vpow2.f32 %v1771_v55  ;;  %v1725_v14 = vsub.f32 %v3377_v28, %v1680_v51 }
 0x43a   :  { %v3485_v40 = vpop.eup %2475  ;;  %v1777_v22 = vmul.f32 1.442695, %v1726_v1 }
 0x43b   :  { %v3487_v2 = vpop.eup %2477  ;;  %v1775_v38 = vmul.f32 1.442695, %v1725_v14  ;;  %v1686_v61 = vpop.xlane.xlu1 %1685  ;;  %1829 = vadd.xlane.f32.xlu1 %v3485_v40 }
 0x43c   :  { %2487 = vpow2.f32 %v1777_v22  ;;  %v1728_v6 = vsub.f32 %v3382_v48, %v1686_v61  ;;  %1827 = vadd.xlane.f32.xlu0 %v3487_v2  ;;  %v1684_v29 = vpop.xlane.xlu0 %1683 }
 0x43d   :  { %2489 = vpow2.f32 %v1775_v38  ;;  %v1727_v5 = vsub.f32 %v3385_v58, %v1684_v29 }
 0x43e   :  { %v3493_v30 = vpop.eup %2479  ;;  %v1781_v28 = vmul.f32 1.442695, %v1728_v6 }
 0x43f   :  { %v3495_v46 = vpop.eup %2481  ;;  %v1779_v44 = vmul.f32 1.442695, %v1727_v5  ;;  %v1690_v4 = vpop.xlane.xlu1 %1689  ;;  %1833 = vadd.xlane.f32.xlu1 %v3493_v30 }
 0x440   :  { %2491 = vpow2.f32 %v1781_v28  ;;  %v1730_v20 = vsub.f32 %v3390_v33, %v1690_v4  ;;  %1831 = vadd.xlane.f32.xlu0 %v3495_v46  ;;  %v1688_v48 = vpop.xlane.xlu0 %1687 }
 0x441   :  { %2493 = vpow2.f32 %v1779_v44  ;;  %v1729_v25 = vsub.f32 %v3393_v57, %v1688_v48 }
 0x442   :  { %v3501_v13 = vpop.eup %2483  ;;  %v1785_v58 = vmul.f32 1.442695, %v1730_v20 }
 0x443   :  { %v3503_v42 = vpop.eup %2485  ;;  %v1783_v21 = vmul.f32 1.442695, %v1729_v25  ;;  %v1694_v12 = vpop.xlane.xlu1 %1693  ;;  %1837 = vadd.xlane.f32.xlu1 %v3501_v13 }
 0x444   :  { %2495 = vpow2.f32 %v1785_v58  ;;  %v1732_v32 = vsub.f32 %v3398_v27, %v1694_v12  ;;  %1835 = vadd.xlane.f32.xlu0 %v3503_v42  ;;  %v1692_v33 = vpop.xlane.xlu0 %1691 }
 0x445   :  { %2497 = vpow2.f32 %v1783_v21  ;;  %v1731_v49 = vsub.f32 %v3401_v17, %v1692_v33 }
 0x446   :  { %v3509_v62 = vpop.eup %2487  ;;  %v1789_v57 = vmul.f32 1.442695, %v1732_v32 }
 0x447   :  { %v3511_v34 = vpop.eup %2489  ;;  %v1787_v19 = vmul.f32 1.442695, %v1731_v49  ;;  %v1698_v11 = vpop.xlane.xlu1 %1697  ;;  %1841 = vadd.xlane.f32.xlu1 %v3509_v62 }
 0x448   :  { %2499 = vpow2.f32 %v1789_v57  ;;  %v1734_v39 = vsub.f32 %v3406_v59, %v1698_v11  ;;  %1839 = vadd.xlane.f32.xlu0 %v3511_v34  ;;  %v1696_v27 = vpop.xlane.xlu0 %1695 }
 0x449   :  { %2501 = vpow2.f32 %v1787_v19  ;;  %v1733_v53 = vsub.f32 %v3409_v7, %v1696_v27 }
 0x44a   :  { %v3517_v16 = vpop.eup %2491  ;;  %v1793_v17 = vmul.f32 1.442695, %v1734_v39 }
 0x44b   :  { %v3519_v8 = vpop.eup %2493  ;;  %v1791_v63 = vmul.f32 1.442695, %v1733_v53  ;;  %v1702_v50 = vpop.xlane.xlu1 %1701  ;;  %1845 = vadd.xlane.f32.xlu1 %v3517_v16 }
 0x44c   :  { %2503 = vpow2.f32 %v1793_v17  ;;  %v1736_v37 = vsub.f32 %v3414_v10, %v1702_v50  ;;  %1843 = vadd.xlane.f32.xlu0 %v3519_v8  ;;  %v1700_v59 = vpop.xlane.xlu0 %1699 }
 0x44d   :  { %2505 = vpow2.f32 %v1791_v63  ;;  %v1735_v0 = vsub.f32 %v3417_v18, %v1700_v59 }
 0x44e   :  { %v3525_v24 = vpop.eup %2495  ;;  %v1797_v7 = vmul.f32 1.442695, %v1736_v37 }
 0x44f   :  { %v3527_v23 = vpop.eup %2497  ;;  %v1795_v55 = vmul.f32 1.442695, %v1735_v0  ;;  %1849 = vadd.xlane.f32.xlu1 %v3525_v24  ;;  %v1706_v43 = vpop.xlane.xlu1 %1705 }
 0x450   :  { %2507 = vpow2.f32 %v1797_v7  ;;  %v1738_v1 = vsub.f32 %v3422_v36, %v1706_v43  ;;  %1847 = vadd.xlane.f32.xlu0 %v3527_v23  ;;  %v1704_v10 = vpop.xlane.xlu0 %1703 }
 0x451   :  { %2509 = vpow2.f32 %v1795_v55  ;;  %v1737_v51 = vsub.f32 %v3425_v9, %v1704_v10 }
 0x452   :  { %v3533_v14 = vpop.eup %2499  ;;  %v1801_v18 = vmul.f32 1.442695, %v1738_v1 }
 0x453   :  { %v3535_v22 = vpop.eup %2501  ;;  %v1799_v38 = vmul.f32 1.442695, %v1737_v51  ;;  %1853 = vadd.xlane.f32.xlu1 %v3533_v14 }
 0x454   :  { %2511 = vpow2.f32 %v1801_v18  ;;  %1851 = vadd.xlane.f32.xlu0 %v3535_v22 }
 0x455   :  { %2513 = vpow2.f32 %v1799_v38 }
 0x456   :  { %v3539_v61 = vpop.eup %2503 }
 0x457   :  { %v3541_v36 = vpop.eup %2505  ;;  %1857 = vadd.xlane.f32.xlu1 %v3539_v61 }
 0x458   :  { %1855 = vadd.xlane.f32.xlu0 %v3541_v36 }
 0x45a   :  { %v3545_v9 = vpop.eup %2507 }
 0x45b   :  { %v3547_v6 = vpop.eup %2509  ;;  %1861 = vadd.xlane.f32.xlu1 %v3545_v9 }
 0x45c   :  { %1859 = vadd.xlane.f32.xlu0 %v3547_v6 }
 0x45e   :  { %v3551_v29 = vpop.eup %2511 }
 0x45f   :  { %v3553_v5 = vpop.eup %2513  ;;  %1865 = vadd.xlane.f32.xlu1 %v3551_v29 }
 0x460   :  { %1863 = vadd.xlane.f32.xlu0 %v3553_v5 }
 0x4a4   :  { %v1806_v28 = vpop.xlane.xlu1 %1805 }
 0x4a5   :  { %2515 = vrcp.f32 %v1806_v28 }
 0x4a8   :  { %v1804_v44 = vpop.xlane.xlu0 %1803 }
 0x4a9   :  { %2517 = vrcp.f32 %v1804_v44 }
 0x4ac   :  { %v1810_v4 = vpop.xlane.xlu1 %1809 }
 0x4ad   :  { %2519 = vrcp.f32 %v1810_v4 }
 0x4af   :  { %v2516_v20 = vpop.eup %2515 }
 0x4b0   :  { %v1932_v48 = vmul.f32 %v2516_v20, %v3433_v60  ;;  %v1808_v25 = vpop.xlane.xlu0 %1807 }
 0x4b1   :  { %2521 = vrcp.f32 %v1808_v25 }
 0x4b2   :  { %1964 = vst [vmem:[#allocation10 + $0x8] sm:$0xff] %v1932_v48 }
 0x4b3   :  { %v2518_v58 = vpop.eup %2517 }
 0x4b4   :  { %v1931_v21 = vmul.f32 %v2518_v58, %v3438_v15  ;;  %v1814_v12 = vpop.xlane.xlu1 %1813 }
 0x4b5   :  { %2523 = vrcp.f32 %v1814_v12  ;;  %v1812_v32 = vpop.xlane.xlu0 %1811 }
 0x4b6   :  { %1963 = vst [vmem:[#allocation10] sm:$0xff] %v1931_v21  ;;  %2525 = vrcp.f32 %v1812_v32 }
 0x4b7   :  { %v2520_v33 = vpop.eup %2519 }
 0x4b8   :  { %v1934_v49 = vmul.f32 %v2520_v33, %v3441_v3 }
 0x4ba   :  { %1966 = vst [vmem:[#allocation10 + $0x18] sm:$0xff] %v1934_v49 }
 0x4bb   :  { %v2522_v57 = vpop.eup %2521 }
 0x4bc   :  { %v1933_v19 = vmul.f32 %v2522_v57, %v3446_v31  ;;  %v1818_v11 = vpop.xlane.xlu1 %1817 }
 0x4bd   :  { %2527 = vrcp.f32 %v1818_v11  ;;  %v1816_v60 = vpop.xlane.xlu0 %1815 }
 0x4be   :  { %1965 = vst [vmem:[#allocation10 + $0x10] sm:$0xff] %v1933_v19  ;;  %2529 = vrcp.f32 %v1816_v60 }
 0x4bf   :  { %v2524_v39 = vpop.eup %2523 }
 0x4c0   :  { %v2526_v27 = vpop.eup %2525  ;;  %v1936_v15 = vmul.f32 %v2524_v39, %v3451_v45  ;;  %v1822_v53 = vpop.xlane.xlu1 %1821 }
 0x4c1   :  { %v1935_v17 = vmul.f32 %v2526_v27, %v3453_v52  ;;  %2531 = vrcp.f32 %v1822_v53  ;;  %v1820_v63 = vpop.xlane.xlu0 %1819 }
 0x4c2   :  { %1968 = vst [vmem:[#allocation10 + $0x28] sm:$0xff] %v1936_v15  ;;  %2533 = vrcp.f32 %v1820_v63 }
 0x4c3   :  { %1967 = vst [vmem:[#allocation10 + $0x20] sm:$0xff] %v1935_v17 }
 0x4c4   :  { %v1826_v3 = vpop.xlane.xlu1 %1825 }
 0x4c5   :  { %2535 = vrcp.f32 %v1826_v3  ;;  %v1824_v31 = vpop.xlane.xlu0 %1823 }
 0x4c6   :  { %2537 = vrcp.f32 %v1824_v31 }
 0x4c7   :  { %v2528_v50 = vpop.eup %2527 }
 0x4c8   :  { %v2530_v37 = vpop.eup %2529  ;;  %v1938_v59 = vmul.f32 %v2528_v50, %v3461_v41  ;;  %v1830_v0 = vpop.xlane.xlu1 %1829 }
 0x4c9   :  { %v1937_v7 = vmul.f32 %v2530_v37, %v3463_v56  ;;  %2539 = vrcp.f32 %v1830_v0  ;;  %v1828_v45 = vpop.xlane.xlu0 %1827 }
 0x4ca   :  { %1970 = vst [vmem:[#allocation10 + $0x38] sm:$0xff] %v1938_v59  ;;  %2541 = vrcp.f32 %v1828_v45 }
 0x4cb   :  { %v2532_v52 = vpop.eup %2531  ;;  %1969 = vst [vmem:[#allocation10 + $0x30] sm:$0xff] %v1937_v7 }
 0x4cc   :  { %v2534_v55 = vpop.eup %2533  ;;  %v1940_v43 = vmul.f32 %v2532_v52, %v3469_v47  ;;  %v1834_v1 = vpop.xlane.xlu1 %1833 }
 0x4cd   :  { %v1939_v10 = vmul.f32 %v2534_v55, %v3471_v54  ;;  %2543 = vrcp.f32 %v1834_v1  ;;  %v1832_v51 = vpop.xlane.xlu0 %1831 }
 0x4ce   :  { %1972 = vst [vmem:[#allocation10 + $0x48] sm:$0xff] %v1940_v43  ;;  %2545 = vrcp.f32 %v1832_v51 }
 0x4cf   :  { %v2536_v41 = vpop.eup %2535  ;;  %1971 = vst [vmem:[#allocation10 + $0x40] sm:$0xff] %v1939_v10 }
 0x4d0   :  { %v2538_v18 = vpop.eup %2537  ;;  %v1942_v56 = vmul.f32 %v2536_v41, %v3477_v26  ;;  %v1838_v38 = vpop.xlane.xlu1 %1837 }
 0x4d1   :  { %v1941_v28 = vmul.f32 %v2538_v18, %v3479_v35  ;;  %2547 = vrcp.f32 %v1838_v38  ;;  %v1836_v44 = vpop.xlane.xlu0 %1835 }
 0x4d2   :  { %1974 = vst [vmem:[#allocation10 + $0x58] sm:$0xff] %v1942_v56  ;;  %2549 = vrcp.f32 %v1836_v44 }
 0x4d3   :  { %v2540_v47 = vpop.eup %2539  ;;  %1973 = vst [vmem:[#allocation10 + $0x50] sm:$0xff] %v1941_v28 }
 0x4d4   :  { %v2542_v4 = vpop.eup %2541  ;;  %v1944_v54 = vmul.f32 %v2540_v47, %v3485_v40  ;;  %v1842_v20 = vpop.xlane.xlu1 %1841 }
 0x4d5   :  { %v1943_v48 = vmul.f32 %v2542_v4, %v3487_v2  ;;  %2551 = vrcp.f32 %v1842_v20  ;;  %v1840_v25 = vpop.xlane.xlu0 %1839 }
 0x4d6   :  { %1976 = vst [vmem:[#allocation10 + $0x68] sm:$0xff] %v1944_v54  ;;  %2553 = vrcp.f32 %v1840_v25 }
 0x4d7   :  { %v2544_v26 = vpop.eup %2543  ;;  %1975 = vst [vmem:[#allocation10 + $0x60] sm:$0xff] %v1943_v48 }
 0x4d8   :  { %v2546_v58 = vpop.eup %2545  ;;  %v1946_v35 = vmul.f32 %v2544_v26, %v3493_v30  ;;  %v1846_v21 = vpop.xlane.xlu1 %1845 }
 0x4d9   :  { %v1945_v12 = vmul.f32 %v2546_v58, %v3495_v46  ;;  %2555 = vrcp.f32 %v1846_v21  ;;  %v1844_v32 = vpop.xlane.xlu0 %1843 }
 0x4da   :  { %1978 = vst [vmem:[#allocation10 + $0x78] sm:$0xff] %v1946_v35  ;;  %2557 = vrcp.f32 %v1844_v32 }
 0x4db   :  { %v2548_v40 = vpop.eup %2547  ;;  %1977 = vst [vmem:[#allocation10 + $0x70] sm:$0xff] %v1945_v12 }
 0x4dc   :  { %v2550_v33 = vpop.eup %2549  ;;  %v1948_v2 = vmul.f32 %v2548_v40, %v3501_v13  ;;  %v1850_v49 = vpop.xlane.xlu1 %1849 }
 0x4dd   :  { %v1947_v57 = vmul.f32 %v2550_v33, %v3503_v42  ;;  %2559 = vrcp.f32 %v1850_v49  ;;  %v1848_v19 = vpop.xlane.xlu0 %1847 }
 0x4de   :  { %1980 = vst [vmem:[#allocation10 + $0x88] sm:$0xff] %v1948_v2  ;;  %2561 = vrcp.f32 %v1848_v19 }
 0x4df   :  { %v2552_v30 = vpop.eup %2551  ;;  %1979 = vst [vmem:[#allocation10 + $0x80] sm:$0xff] %v1947_v57 }
 0x4e0   :  { %v2554_v11 = vpop.eup %2553  ;;  %v1950_v46 = vmul.f32 %v2552_v30, %v3509_v62  ;;  %v1854_v60 = vpop.xlane.xlu1 %1853 }
 0x4e1   :  { %v1949_v39 = vmul.f32 %v2554_v11, %v3511_v34  ;;  %2563 = vrcp.f32 %v1854_v60  ;;  %v1852_v27 = vpop.xlane.xlu0 %1851 }
 0x4e2   :  { %1982 = vst [vmem:[#allocation10 + $0x98] sm:$0xff] %v1950_v46  ;;  %2565 = vrcp.f32 %v1852_v27 }
 0x4e3   :  { %v2556_v13 = vpop.eup %2555  ;;  %1981 = vst [vmem:[#allocation10 + $0x90] sm:$0xff] %v1949_v39 }
 0x4e4   :  { %v2558_v15 = vpop.eup %2557  ;;  %v1952_v42 = vmul.f32 %v2556_v13, %v3517_v16  ;;  %v1858_v53 = vpop.xlane.xlu1 %1857 }
 0x4e5   :  { %v1951_v17 = vmul.f32 %v2558_v15, %v3519_v8  ;;  %2567 = vrcp.f32 %v1858_v53  ;;  %v1856_v63 = vpop.xlane.xlu0 %1855 }
 0x4e6   :  { %1984 = vst [vmem:[#allocation10 + $0xa8] sm:$0xff] %v1952_v42  ;;  %2569 = vrcp.f32 %v1856_v63 }
 0x4e7   :  { %v2560_v62 = vpop.eup %2559  ;;  %1983 = vst [vmem:[#allocation10 + $0xa0] sm:$0xff] %v1951_v17 }
 0x4e8   :  { %v2562_v3 = vpop.eup %2561  ;;  %v1954_v34 = vmul.f32 %v2560_v62, %v3525_v24  ;;  %v1862_v31 = vpop.xlane.xlu1 %1861 }
 0x4e9   :  { %v1953_v50 = vmul.f32 %v2562_v3, %v3527_v23  ;;  %2571 = vrcp.f32 %v1862_v31  ;;  %v1860_v37 = vpop.xlane.xlu0 %1859 }
 0x4ea   :  { %1986 = vst [vmem:[#allocation10 + $0xb8] sm:$0xff] %v1954_v34  ;;  %2573 = vrcp.f32 %v1860_v37 }
 0x4eb   :  { %v2564_v16 = vpop.eup %2563  ;;  %1985 = vst [vmem:[#allocation10 + $0xb0] sm:$0xff] %v1953_v50 }
 0x4ec   :  { %v2566_v59 = vpop.eup %2565  ;;  %v1956_v8 = vmul.f32 %v2564_v16, %v3533_v14  ;;  %v1866_v0 = vpop.xlane.xlu1 %1865 }
 0x4ed   :  { %v1955_v7 = vmul.f32 %v2566_v59, %v3535_v22  ;;  %2575 = vrcp.f32 %v1866_v0  ;;  %v1864_v45 = vpop.xlane.xlu0 %1863 }
 0x4ee   :  { %1988 = vst [vmem:[#allocation10 + $0xc8] sm:$0xff] %v1956_v8  ;;  %2577 = vrcp.f32 %v1864_v45 }
 0x4ef   :  { %v2568_v24 = vpop.eup %2567  ;;  %1987 = vst [vmem:[#allocation10 + $0xc0] sm:$0xff] %v1955_v7 }
 0x4f0   :  { %v2570_v52 = vpop.eup %2569  ;;  %v1958_v23 = vmul.f32 %v2568_v24, %v3539_v61 }
 0x4f1   :  { %v1957_v55 = vmul.f32 %v2570_v52, %v3541_v36 }
 0x4f2   :  { %1990 = vst [vmem:[#allocation10 + $0xd8] sm:$0xff] %v1958_v23 }
 0x4f3   :  { %v2572_v43 = vpop.eup %2571  ;;  %1989 = vst [vmem:[#allocation10 + $0xd0] sm:$0xff] %v1957_v55 }
 0x4f4   :  { %v2574_v1 = vpop.eup %2573  ;;  %v1960_v14 = vmul.f32 %v2572_v43, %v3545_v9 }
 0x4f5   :  { %v1959_v10 = vmul.f32 %v2574_v1, %v3547_v6 }
 0x4f6   :  { %1992 = vst [vmem:[#allocation10 + $0xe8] sm:$0xff] %v1960_v14 }
 0x4f7   :  { %v2576_v22 = vpop.eup %2575  ;;  %1991 = vst [vmem:[#allocation10 + $0xe0] sm:$0xff] %v1959_v10 }
 0x4f8   :  { %v2578_v51 = vpop.eup %2577  ;;  %v1962_v41 = vmul.f32 %v2576_v22, %v3551_v29 }
 0x4f9   :  { %v1961_v61 = vmul.f32 %v2578_v51, %v3553_v5 }
 0x4fa   :  { %1994 = vst [vmem:[#allocation10 + $0xf8] sm:$0xff] %v1962_v41 }
 0x4fb   :  { %1993 = vst [vmem:[#allocation10 + $0xf0] sm:$0xff] %v1961_v61 }
 0x4fc   :  { %2678 = shalt.err (!%p2675_p8)
}
 0x4fd   :  { %s2679_s12 = scalar_lea.hbm %s3611_s7, 4096 }
 0x4fe   :  { %p2680_p9 = scmp.ne.s32.totalorder %s3611_s7, %s2679_s12  ;;  %p2683_p10 = scmp.lt.u32.totalorder %s2679_s12, %s3611_s7 }
 0x500   :  { %p2685_p11 = pnand %p2683_p10, %p2680_p9 }
 0x502   :  { %2688 = shalt.err (!%p2685_p11)
}
 0x503   :  { %2006 = dma.vmem_to_hbm [thread:$0]  %s2001_s8, 4096, %s3611_s7, [#allocation4], %s2701_s1, %s2701_s1, %s2702_s25  }
 0x504   :  { %2695 = dma.done.wait [#allocation4], 4096  }
 0x505   :  { %2696 = vsyncadd [#allocation4], 4294963200 }
 0x506   :  { %2010 = vsyncpa [#allocation3], 1 }
 0x507   :  { %2011 = vsyncpa [#allocation6], 1 }
 0x508   :  { %2012 = vsyncpa [#allocation9], 1 }
 0x509   :  { %2013 = vsyncpa [#allocation4], 1 }

</bundles_post_ra>
